<compile_context>
chip_gen: v7x
topology: tpu7x:2x2x1
jax: 0.10.0
libtpu: 0.0.40
codegen_flags: <defaults>
</compile_context>

<pallas_src>
import functools

import jax
import jax.numpy as jnp
from jax import lax
from jax.experimental import pallas as pl
from jax.experimental.pallas import tpu as pltpu

LANE = 128
SUBLANE = 8

# Cache: does this runtime accept pl.Buffered(1) single-buffered weight BlockSpecs?
_BUFFERED_WEIGHTS_OK = None


def _round_up(v, m):
    return (v + m - 1) // m * m


def _basic_block_kernel(x_ref, halo_ref, w1_ref, b1_ref, w2_ref, b2_ref, out_ref,
                        *, seq_len, tile_rows):
    # x_ref:   (1, TL, Cp)    this tile's body rows (also the residual identity rows)
    # halo_ref:(1, 1, 4, Cp)  rows [-2, -1] and [TL, TL+1] relative to this tile (zero-padded)
    # w*_ref:  (3, Cp, Cp)    tap-major conv weights with eval-BN scale folded in
    # b*_ref:  (1, Cp)        folded BN bias (f32)
    # out_ref: (1, TL, Cp)
    TL = tile_rows
    lt = pl.program_id(1)

    body = x_ref[0]            # (TL, Cp) compute dtype
    halo = halo_ref[0, 0]      # (4, Cp)

    # Assemble the 2-row-halo window once (single VMEM copy; no scratch round trip).
    xw = jnp.concatenate([halo[0:2], body, halo[2:4]], axis=0)   # (TL+4, Cp)

    # conv1 (BN1 scale pre-folded): three tap-shifted MXU dots, f32 accumulation.
    # Accumulator initialised from tap 0; dots kept adjacent (no interleaved VPU work).
    acc1 = jnp.dot(xw[0:TL + 2], w1_ref[0], preferred_element_type=jnp.float32)
    acc1 += jnp.dot(xw[1:TL + 3], w1_ref[1], preferred_element_type=jnp.float32)
    acc1 += jnp.dot(xw[2:TL + 4], w1_ref[2], preferred_element_type=jnp.float32)

    h = jnp.maximum(acc1 + b1_ref[0], 0.0)                        # (TL+2, Cp) f32

    # Rows outside the true sequence [0, seq_len) are conv2's zero padding: zero them so
    # halo / L-padding rows never leak conv1 activations into conv2.
    gidx = lt * TL - 1 + lax.broadcasted_iota(jnp.int32, (TL + 2, 1), 0)
    h = jnp.where((gidx >= 0) & (gidx < seq_len), h, 0.0)

    # conv2 (BN2 scale pre-folded): three tap-shifted MXU dots on h directly (no padded copy).
    hc = h.astype(w2_ref.dtype)
    acc2 = jnp.dot(hc[0:TL], w2_ref[0], preferred_element_type=jnp.float32)
    acc2 += jnp.dot(hc[1:TL + 1], w2_ref[1], preferred_element_type=jnp.float32)
    acc2 += jnp.dot(hc[2:TL + 2], w2_ref[2], preferred_element_type=jnp.float32)

    # BN2 bias + residual (from the already-resident body tile -> no second x stream) + ReLU.
    # Note: in the bf16 streaming path the residual is added at bf16 precision of x.
    out = acc2 + b2_ref[0] + body.astype(jnp.float32)
    out_ref[0] = jnp.maximum(out, 0.0).astype(out_ref.dtype)


def _fold_bn_into_conv(w, bn, eps, cp, compute_dtype):
    """w: (Cout, Cin, 3) PyTorch Conv1d weight. Returns tap-major padded weight + bias."""
    cout, cin, _ = w.shape
    scale = bn["gamma"] / jnp.sqrt(bn["running_var"] + eps)
    bias = bn["beta"] - bn["running_mean"] * scale
    w_t = jnp.transpose(w, (2, 1, 0)).astype(jnp.float32) * scale[None, None, :]  # (3,Cin,Cout)
    w_t = jnp.pad(w_t, ((0, 0), (0, cp - cin), (0, cp - cout)))
    b_p = jnp.pad(bias, (0, cp - cout)).reshape(1, cp).astype(jnp.float32)
    return w_t.astype(compute_dtype), b_p


def basic_block_apply_nlc(xp, w1_t, b1_p, w2_t, b2_p, *,
                          out_dtype=jnp.float32, compute_dtype=None, max_tile_rows=512):
    """Fused BasicBlock on channel-padded NLC activations.

    xp: (N, L, Cp) with Cp a multiple of 128 (zero-padded channels).
    Returns (N, L, Cp) in out_dtype.  Chain blocks in this layout to avoid per-block
    transpose / pad / slice HBM round-trips.
    """
    global _BUFFERED_WEIGHTS_OK
    N, L, Cp = xp.shape
    assert Cp % LANE == 0, "channels must be padded to a multiple of 128 lanes"
    if compute_dtype is None:
        compute_dtype = w1_t.dtype

    # L tile: biggest of (L, max_tile_rows), rounded to sublane multiple. 512 rows keeps the
    # per-step working set ~10 MiB even at Cp=512 -> fits the 48 MiB limit on every generation
    # (v7x: 64 MiB physical). Use >=256 to fill the 256-wide v6e/v7x MXU when L allows.
    TL = min(_round_up(L, SUBLANE), _round_up(max_tile_rows, SUBLANE))
    nt = pl.cdiv(L, TL)
    Lp = nt * TL

    xpc = xp.astype(compute_dtype)
    body = jnp.pad(xpc, ((0, 0), (0, Lp - L), (0, 0)))                     # (N, Lp, Cp)
    # Tiny halo side array: rows [lt*TL-2, lt*TL) and [lt*TL+TL, lt*TL+TL+2), zero outside.
    xh = jnp.pad(xpc, ((0, 0), (2, Lp - L + 2), (0, 0)))                   # (N, Lp+4, Cp)
    left = xh[:, :Lp].reshape(N, nt, TL, Cp)[:, :, :2]
    right = xh[:, 4:4 + Lp].reshape(N, nt, TL, Cp)[:, :, TL - 2:]
    halo = jnp.concatenate([left, right], axis=2)                           # (N, nt, 4, Cp)

    kernel = functools.partial(_basic_block_kernel, seq_len=L, tile_rows=TL)

    def call(buffered_weights):
        wmode = {"pipeline_mode": pl.Buffered(1)} if buffered_weights else {}
        grid_spec = pltpu.PrefetchScalarGridSpec(
            num_scalar_prefetch=0,
            grid=(N, nt),
            in_specs=[
                pl.BlockSpec((1, TL, Cp), lambda n, lt: (n, lt, 0)),         # body / identity
                pl.BlockSpec((1, 1, 4, Cp), lambda n, lt: (n, lt, 0, 0)),    # halo rows
                pl.BlockSpec((3, Cp, Cp), lambda n, lt: (0, 0, 0), **wmode),  # w1 (constant)
                pl.BlockSpec((1, Cp), lambda n, lt: (0, 0)),                  # b1
                pl.BlockSpec((3, Cp, Cp), lambda n, lt: (0, 0, 0), **wmode),  # w2 (constant)
                pl.BlockSpec((1, Cp), lambda n, lt: (0, 0)),                  # b2
            ],
            out_specs=pl.BlockSpec((1, TL, Cp), lambda n, lt: (n, lt, 0)),
        )
        return pl.pallas_call(
            kernel,
            out_shape=jax.ShapeDtypeStruct((N, Lp, Cp), out_dtype),
            grid_spec=grid_spec,
            compiler_params=pltpu.CompilerParams(
                dimension_semantics=("parallel", "parallel"),
                vmem_limit_bytes=48 * 1024 * 1024,
            ),
        )(body, halo, w1_t, b1_p, w2_t, b2_p)

    if _BUFFERED_WEIGHTS_OK is None:
        try:
            out = jax.block_until_ready(call(True))
            _BUFFERED_WEIGHTS_OK = True
        except Exception:
            _BUFFERED_WEIGHTS_OK = False
            out = call(False)
    else:
        out = call(_BUFFERED_WEIGHTS_OK)

    return out[:, :L, :]


def basic_block_forward(x_ncl, w1, bn1, w2, bn2, *, eps=1e-5,
                        compute_dtype=jnp.float32, out_dtype=jnp.float32,
                        max_tile_rows=512):
    """PyTorch-layout wrapper.  x_ncl: (N, Cin, L); w1: (Cout, Cin, 3); w2: (Cout, Cout, 3);
    bn1/bn2: dicts with gamma/beta/running_mean/running_var (Cout,). stride=1, no downsample,
    eval-mode BN.  For chained blocks call basic_block_apply_nlc directly on padded NLC."""
    N, Cin, L = x_ncl.shape
    Cout = w1.shape[0]
    assert Cin == Cout, "identity residual requires Cin == Cout (stride=1, no downsample)"
    Cp = _round_up(Cout, LANE)

    # Layout boundary (NCL -> padded NLC).  These passes exist only at network boundaries.
    xp = jnp.pad(jnp.transpose(x_ncl, (0, 2, 1)).astype(jnp.float32),
                 ((0, 0), (0, 0), (0, Cp - Cin)))

    w1_t, b1_p = _fold_bn_into_conv(w1, bn1, eps, Cp, compute_dtype)
    w2_t, b2_p = _fold_bn_into_conv(w2, bn2, eps, Cp, compute_dtype)

    out = basic_block_apply_nlc(xp, w1_t, b1_p, w2_t, b2_p,
                                out_dtype=out_dtype, compute_dtype=compute_dtype,
                                max_tile_rows=max_tile_rows)
    return jnp.transpose(out[:, :, :Cout], (0, 2, 1))       # back to (N, Cout, L)


def _reference_forward(x_ncl, w1, bn1, w2, bn2, eps=1e-5):
    """Pure-JAX reference (lax.conv_general_dilated), NCL layout, eval-mode BN."""
    def conv(x, w):
        return jax.lax.conv_general_dilated(
            x, w, window_strides=(1,), padding=((1, 1),),
            dimension_numbers=("NCH", "OIH", "NCH"))

    def bn(x, p):
        scale = (p["gamma"] / jnp.sqrt(p["running_var"] + eps)).reshape(1, -1, 1)
        bias = (p["beta"] - p["running_mean"] * p["gamma"]
                / jnp.sqrt(p["running_var"] + eps)).reshape(1, -1, 1)
        return x * scale + bias

    out = jnp.maximum(bn(conv(x_ncl, w1), bn1), 0.0)
    out = bn(conv(out, w2), bn2) + x_ncl
    return jnp.maximum(out, 0.0)


if __name__ == "__main__":
    key = jax.random.PRNGKey(0)
    ks = jax.random.split(key, 12)

    N, C, L = 2, 4, 16   # inplanes = planes = 4, stride = 1, downsample = None
    x = jax.random.normal(ks[0], (N, C, L), dtype=jnp.float32)
    w1 = 0.1 * jax.random.normal(ks[1], (C, C, 3), dtype=jnp.float32)
    w2 = 0.1 * jax.random.normal(ks[2], (C, C, 3), dtype=jnp.float32)

    def mk_bn(kg, kb, km, kv):
        return dict(
            gamma=1.0 + 0.1 * jax.random.normal(kg, (C,), dtype=jnp.float32),
            beta=0.1 * jax.random.normal(kb, (C,), dtype=jnp.float32),
            running_mean=0.1 * jax.random.normal(km, (C,), dtype=jnp.float32),
            running_var=jnp.abs(1.0 + 0.1 * jax.random.normal(kv, (C,), dtype=jnp.float32)))

    bn1 = mk_bn(ks[3], ks[4], ks[5], ks[6])
    bn2 = mk_bn(ks[7], ks[8], ks[9], ks[10])

    ref = _reference_forward(x, w1, bn1, w2, bn2)

    # f32 path: exact-semantics check.
    out_f32 = jax.block_until_ready(basic_block_forward(x, w1, bn1, w2, bn2))
    assert out_f32.shape == (N, C, L)
    assert jnp.allclose(out_f32, ref, atol=1e-4, rtol=1e-4), "f32 mismatch vs reference"

    # bf16 streaming / bf16 output path (f32 accumulation) for v6e/v7x MXU: looser tolerance.
    out_bf16 = jax.block_until_ready(basic_block_forward(
        x, w1, bn1, w2, bn2, compute_dtype=jnp.bfloat16, out_dtype=jnp.bfloat16))
    assert out_bf16.shape == (N, C, L)
    assert jnp.allclose(out_bf16.astype(jnp.float32), ref, atol=7e-2, rtol=7e-2), \
        "bf16 mismatch vs reference"

    # Multi-tile (halo) path: L=64 split into two 32-row tiles exercises the L-grid + halo.
    L2 = 64
    x2 = jax.random.normal(ks[11], (N, C, L2), dtype=jnp.float32)
    ref2 = _reference_forward(x2, w1, bn1, w2, bn2)
    out2 = jax.block_until_ready(
        basic_block_forward(x2, w1, bn1, w2, bn2, max_tile_rows=32))
    assert out2.shape == (N, C, L2)
    assert jnp.allclose(out2, ref2, atol=1e-4, rtol=1e-4), "multi-tile mismatch vs reference"

    print("KERNEL_OK")
</pallas_src>

<mosaic_0001>
module attributes {stable_mosaic.version = 11 : i64} {
  func.func @_basic_block_kernel(%arg0: i32, %arg1: i32, %arg2: memref<1x16x128xf32, #tpu.memory_space<vmem>>, %arg3: memref<1x1x4x128xf32, #tpu.memory_space<vmem>>, %arg4: memref<3x128x128xf32, #tpu.memory_space<vmem>>, %arg5: memref<1x128xf32, #tpu.memory_space<vmem>>, %arg6: memref<3x128x128xf32, #tpu.memory_space<vmem>>, %arg7: memref<1x128xf32, #tpu.memory_space<vmem>>, %arg8: memref<1x16x128xf32, #tpu.memory_space<vmem>>) attributes {dimension_semantics = [#tpu.dimension_semantics<parallel>, #tpu.dimension_semantics<parallel>], iteration_bounds = array<i64: 2, 1>, scalar_prefetch = 0 : i64, scratch_operands = 0 : i64, tpu.core_type = #tpu.core_type<tc>, window_params = [{transform_indices = @transform_0, window_bounds = array<i64: 1, 16, 128>}, {transform_indices = @transform_1, window_bounds = array<i64: 1, 1, 4, 128>}, {pipeline_mode = #tpu.pipeline_mode<synchronous>, transform_indices = @transform_2, window_bounds = array<i64: 3, 128, 128>}, {pipeline_mode = #tpu.pipeline_mode<synchronous>, transform_indices = @transform_3, window_bounds = array<i64: 1, 128>}, {pipeline_mode = #tpu.pipeline_mode<synchronous>, transform_indices = @transform_4, window_bounds = array<i64: 3, 128, 128>}, {pipeline_mode = #tpu.pipeline_mode<synchronous>, transform_indices = @transform_5, window_bounds = array<i64: 1, 128>}, {transform_indices = @transform_6, window_bounds = array<i64: 1, 16, 128>}]} {
    %c0 = arith.constant 0 : index
    %c0_0 = arith.constant 0 : index
    %c0_1 = arith.constant 0 : index
    %0 = vector.load %arg2[%c0, %c0_0, %c0_1] : memref<1x16x128xf32, #tpu.memory_space<vmem>>, vector<1x16x128xf32>
    %1 = vector.shape_cast %0 : vector<1x16x128xf32> to vector<16x128xf32>
    %c0_2 = arith.constant 0 : index
    %c0_3 = arith.constant 0 : index
    %c0_4 = arith.constant 0 : index
    %c0_5 = arith.constant 0 : index
    %2 = vector.load %arg3[%c0_2, %c0_3, %c0_4, %c0_5] : memref<1x1x4x128xf32, #tpu.memory_space<vmem>>, vector<1x1x4x128xf32>
    %3 = vector.shape_cast %2 : vector<1x1x4x128xf32> to vector<4x128xf32>
    %4 = vector.extract_strided_slice %3 {offsets = [0, 0], sizes = [2, 128], strides = [1, 1]} : vector<4x128xf32> to vector<2x128xf32>
    %5 = vector.extract_strided_slice %3 {offsets = [2, 0], sizes = [2, 128], strides = [1, 1]} : vector<4x128xf32> to vector<2x128xf32>
    %6 = tpu.concatenate %4, %1, %5 in 0 : vector<2x128xf32>, vector<16x128xf32>, vector<2x128xf32> -> vector<20x128xf32>
    %7 = vector.extract_strided_slice %6 {offsets = [0, 0], sizes = [18, 128], strides = [1, 1]} : vector<20x128xf32> to vector<18x128xf32>
    %c0_6 = arith.constant 0 : index
    %c0_7 = arith.constant 0 : index
    %c0_8 = arith.constant 0 : index
    %8 = vector.load %arg4[%c0_6, %c0_7, %c0_8] : memref<3x128x128xf32, #tpu.memory_space<vmem>>, vector<1x128x128xf32>
    %9 = vector.shape_cast %8 : vector<1x128x128xf32> to vector<128x128xf32>
    %cst = arith.constant dense<0.000000e+00> : vector<18x128xf32>
    %10 = tpu.matmul %7, %9, %cst {dimension_numbers = #tpu.dot_dimension_numbers<[1], [0], [0], [1], [0, 0, 1, 1], [], []>} : vector<18x128xf32>, vector<128x128xf32>, vector<18x128xf32> -> vector<18x128xf32>
    %11 = vector.extract_strided_slice %6 {offsets = [1, 0], sizes = [18, 128], strides = [1, 1]} : vector<20x128xf32> to vector<18x128xf32>
    %c1 = arith.constant 1 : index
    %c0_9 = arith.constant 0 : index
    %c0_10 = arith.constant 0 : index
    %12 = vector.load %arg4[%c1, %c0_9, %c0_10] : memref<3x128x128xf32, #tpu.memory_space<vmem>>, vector<1x128x128xf32>
    %13 = vector.shape_cast %12 : vector<1x128x128xf32> to vector<128x128xf32>
    %cst_11 = arith.constant dense<0.000000e+00> : vector<18x128xf32>
    %14 = tpu.matmul %11, %13, %cst_11 {dimension_numbers = #tpu.dot_dimension_numbers<[1], [0], [0], [1], [0, 0, 1, 1], [], []>} : vector<18x128xf32>, vector<128x128xf32>, vector<18x128xf32> -> vector<18x128xf32>
    %15 = arith.addf %10, %14 : vector<18x128xf32>
    %16 = vector.extract_strided_slice %6 {offsets = [2, 0], sizes = [18, 128], strides = [1, 1]} : vector<20x128xf32> to vector<18x128xf32>
    %c2 = arith.constant 2 : index
    %c0_12 = arith.constant 0 : index
    %c0_13 = arith.constant 0 : index
    %17 = vector.load %arg4[%c2, %c0_12, %c0_13] : memref<3x128x128xf32, #tpu.memory_space<vmem>>, vector<1x128x128xf32>
    %18 = vector.shape_cast %17 : vector<1x128x128xf32> to vector<128x128xf32>
    %cst_14 = arith.constant dense<0.000000e+00> : vector<18x128xf32>
    %19 = tpu.matmul %16, %18, %cst_14 {dimension_numbers = #tpu.dot_dimension_numbers<[1], [0], [0], [1], [0, 0, 1, 1], [], []>} : vector<18x128xf32>, vector<128x128xf32>, vector<18x128xf32> -> vector<18x128xf32>
    %20 = arith.addf %15, %19 : vector<18x128xf32>
    %c0_15 = arith.constant 0 : index
    %c0_16 = arith.constant 0 : index
    %21 = vector.load %arg5[%c0_15, %c0_16] : memref<1x128xf32, #tpu.memory_space<vmem>>, vector<1x128xf32>
    %22 = vector.shape_cast %21 : vector<1x128xf32> to vector<128xf32>
    %23 = vector.shape_cast %22 : vector<128xf32> to vector<1x128xf32>
    %24 = vector.broadcast %23 : vector<1x128xf32> to vector<18x128xf32>
    %25 = arith.addf %20, %24 : vector<18x128xf32>
    %cst_17 = arith.constant 0.000000e+00 : f32
    %26 = vector.broadcast %cst_17 : f32 to vector<18x128xf32>
    %27 = arith.maximumf %25, %26 : vector<18x128xf32>
    %c16_i32 = arith.constant 16 : i32
    %28 = arith.muli %arg1, %c16_i32 : i32
    %c1_i32 = arith.constant 1 : i32
    %29 = arith.subi %28, %c1_i32 : i32
    %30 = tpu.iota {dimensions = array<i32: 0>} : vector<18x1xi32>
    %31 = vector.broadcast %29 : i32 to vector<18x1xi32>
    %32 = arith.addi %31, %30 : vector<18x1xi32>
    %c0_i32 = arith.constant 0 : i32
    %33 = vector.broadcast %c0_i32 : i32 to vector<18x1xi32>
    %34 = arith.cmpi sge, %32, %33 : vector<18x1xi32>
    %c16_i32_18 = arith.constant 16 : i32
    %35 = vector.broadcast %c16_i32_18 : i32 to vector<18x1xi32>
    %36 = arith.cmpi slt, %32, %35 : vector<18x1xi32>
    %37 = arith.andi %34, %36 : vector<18x1xi1>
    %cst_19 = arith.constant 0.000000e+00 : f32
    %38 = vector.shape_cast %37 : vector<18x1xi1> to vector<18x1xi1>
    %39 = vector.broadcast %38 : vector<18x1xi1> to vector<18x128xi1>
    %40 = vector.broadcast %cst_19 : f32 to vector<18x128xf32>
    %41 = arith.select %39, %27, %40 : vector<18x128xi1>, vector<18x128xf32>
    %42 = vector.extract_strided_slice %41 {offsets = [0, 0], sizes = [16, 128], strides = [1, 1]} : vector<18x128xf32> to vector<16x128xf32>
    %c0_20 = arith.constant 0 : index
    %c0_21 = arith.constant 0 : index
    %c0_22 = arith.constant 0 : index
    %43 = vector.load %arg6[%c0_20, %c0_21, %c0_22] : memref<3x128x128xf32, #tpu.memory_space<vmem>>, vector<1x128x128xf32>
    %44 = vector.shape_cast %43 : vector<1x128x128xf32> to vector<128x128xf32>
    %cst_23 = arith.constant dense<0.000000e+00> : vector<16x128xf32>
    %45 = tpu.matmul %42, %44, %cst_23 {dimension_numbers = #tpu.dot_dimension_numbers<[1], [0], [0], [1], [0, 0, 1, 1], [], []>} : vector<16x128xf32>, vector<128x128xf32>, vector<16x128xf32> -> vector<16x128xf32>
    %46 = vector.extract_strided_slice %41 {offsets = [1, 0], sizes = [16, 128], strides = [1, 1]} : vector<18x128xf32> to vector<16x128xf32>
    %c1_24 = arith.constant 1 : index
    %c0_25 = arith.constant 0 : index
    %c0_26 = arith.constant 0 : index
    %47 = vector.load %arg6[%c1_24, %c0_25, %c0_26] : memref<3x128x128xf32, #tpu.memory_space<vmem>>, vector<1x128x128xf32>
    %48 = vector.shape_cast %47 : vector<1x128x128xf32> to vector<128x128xf32>
    %cst_27 = arith.constant dense<0.000000e+00> : vector<16x128xf32>
    %49 = tpu.matmul %46, %48, %cst_27 {dimension_numbers = #tpu.dot_dimension_numbers<[1], [0], [0], [1], [0, 0, 1, 1], [], []>} : vector<16x128xf32>, vector<128x128xf32>, vector<16x128xf32> -> vector<16x128xf32>
    %50 = arith.addf %45, %49 : vector<16x128xf32>
    %51 = vector.extract_strided_slice %41 {offsets = [2, 0], sizes = [16, 128], strides = [1, 1]} : vector<18x128xf32> to vector<16x128xf32>
    %c2_28 = arith.constant 2 : index
    %c0_29 = arith.constant 0 : index
    %c0_30 = arith.constant 0 : index
    %52 = vector.load %arg6[%c2_28, %c0_29, %c0_30] : memref<3x128x128xf32, #tpu.memory_space<vmem>>, vector<1x128x128xf32>
    %53 = vector.shape_cast %52 : vector<1x128x128xf32> to vector<128x128xf32>
    %cst_31 = arith.constant dense<0.000000e+00> : vector<16x128xf32>
    %54 = tpu.matmul %51, %53, %cst_31 {dimension_numbers = #tpu.dot_dimension_numbers<[1], [0], [0], [1], [0, 0, 1, 1], [], []>} : vector<16x128xf32>, vector<128x128xf32>, vector<16x128xf32> -> vector<16x128xf32>
    %55 = arith.addf %50, %54 : vector<16x128xf32>
    %c0_32 = arith.constant 0 : index
    %c0_33 = arith.constant 0 : index
    %56 = vector.load %arg7[%c0_32, %c0_33] : memref<1x128xf32, #tpu.memory_space<vmem>>, vector<1x128xf32>
    %57 = vector.shape_cast %56 : vector<1x128xf32> to vector<128xf32>
    %58 = vector.shape_cast %57 : vector<128xf32> to vector<1x128xf32>
    %59 = vector.broadcast %58 : vector<1x128xf32> to vector<16x128xf32>
    %60 = arith.addf %55, %59 : vector<16x128xf32>
    %61 = arith.addf %60, %1 : vector<16x128xf32>
    %cst_34 = arith.constant 0.000000e+00 : f32
    %62 = vector.broadcast %cst_34 : f32 to vector<16x128xf32>
    %63 = arith.maximumf %61, %62 : vector<16x128xf32>
    %c0_35 = arith.constant 0 : index
    %c0_36 = arith.constant 0 : index
    %c0_37 = arith.constant 0 : index
    %64 = vector.load %arg8[%c0_35, %c0_36, %c0_37] : memref<1x16x128xf32, #tpu.memory_space<vmem>>, vector<1x16x128xf32>
    %65 = vector.shape_cast %64 : vector<1x16x128xf32> to vector<16x128xf32>
    %66 = vector.shape_cast %63 : vector<16x128xf32> to vector<1x16x128xf32>
    tpu.vector_store %arg8[%c0_35, %c0_36, %c0_37], %66 {strides = array<i32>} : memref<1x16x128xf32, #tpu.memory_space<vmem>>, vector<1x16x128xf32>,
    return
  }
  func.func @transform_0(%arg0: i32, %arg1: i32) -> (i32, i32, i32) {
    %c0_i32 = arith.constant 0 : i32
    %c0_i32_0 = arith.constant 0 : i32
    return %arg0, %arg1, %c0_i32 : i32, i32, i32
  }
  func.func @transform_1(%arg0: i32, %arg1: i32) -> (i32, i32, i32, i32) {
    %c0_i32 = arith.constant 0 : i32
    %c0_i32_0 = arith.constant 0 : i32
    %c0_i32_1 = arith.constant 0 : i32
    return %arg0, %arg1, %c0_i32, %c0_i32_0 : i32, i32, i32, i32
  }
  func.func @transform_2(%arg0: i32, %arg1: i32) -> (i32, i32, i32) {
    %c0_i32 = arith.constant 0 : i32
    %c0_i32_0 = arith.constant 0 : i32
    %c0_i32_1 = arith.constant 0 : i32
    %c0_i32_2 = arith.constant 0 : i32
    return %c0_i32, %c0_i32_0, %c0_i32_1 : i32, i32, i32
  }
  func.func @transform_3(%arg0: i32, %arg1: i32) -> (i32, i32) {
    %c0_i32 = arith.constant 0 : i32
    %c0_i32_0 = arith.constant 0 : i32
    %c0_i32_1 = arith.constant 0 : i32
    return %c0_i32, %c0_i32_0 : i32, i32
  }
  func.func @transform_4(%arg0: i32, %arg1: i32) -> (i32, i32, i32) {
    %c0_i32 = arith.constant 0 : i32
    %c0_i32_0 = arith.constant 0 : i32
    %c0_i32_1 = arith.constant 0 : i32
    %c0_i32_2 = arith.constant 0 : i32
    return %c0_i32, %c0_i32_0, %c0_i32_1 : i32, i32, i32
  }
  func.func @transform_5(%arg0: i32, %arg1: i32) -> (i32, i32) {
    %c0_i32 = arith.constant 0 : i32
    %c0_i32_0 = arith.constant 0 : i32
    %c0_i32_1 = arith.constant 0 : i32
    return %c0_i32, %c0_i32_0 : i32, i32
  }
  func.func @transform_6(%arg0: i32, %arg1: i32) -> (i32, i32, i32) {
    %c0_i32 = arith.constant 0 : i32
    %c0_i32_0 = arith.constant 0 : i32
    return %arg0, %arg1, %c0_i32 : i32, i32, i32
  }
}

module attributes {stable_mosaic.version = 11 : i64} {
  func.func @_basic_block_kernel(%arg0: i32, %arg1: i32, %arg2: memref<1x16x128xf32, #tpu.memory_space<vmem>>, %arg3: memref<1x1x4x128xf32, #tpu.memory_space<vmem>>, %arg4: memref<3x128x128xf32, #tpu.memory_space<vmem>>, %arg5: memref<1x128xf32, #tpu.memory_space<vmem>>, %arg6: memref<3x128x128xf32, #tpu.memory_space<vmem>>, %arg7: memref<1x128xf32, #tpu.memory_space<vmem>>, %arg8: memref<1x16x128xf32, #tpu.memory_space<vmem>>) attributes {dimension_semantics = [#tpu.dimension_semantics<parallel>, #tpu.dimension_semantics<parallel>], iteration_bounds = array<i64: 2, 1>, scalar_prefetch = 0 : i64, scratch_operands = 0 : i64, tpu.core_type = #tpu.core_type<tc>, window_params = [{transform_indices = @transform_0, window_bounds = array<i64: 1, 16, 128>}, {transform_indices = @transform_1, window_bounds = array<i64: 1, 1, 4, 128>}, {pipeline_mode = #tpu.pipeline_mode<synchronous>, transform_indices = @transform_2, window_bounds = array<i64: 3, 128, 128>}, {pipeline_mode = #tpu.pipeline_mode<synchronous>, transform_indices = @transform_3, window_bounds = array<i64: 1, 128>}, {pipeline_mode = #tpu.pipeline_mode<synchronous>, transform_indices = @transform_4, window_bounds = array<i64: 3, 128, 128>}, {pipeline_mode = #tpu.pipeline_mode<synchronous>, transform_indices = @transform_5, window_bounds = array<i64: 1, 128>}, {transform_indices = @transform_6, window_bounds = array<i64: 1, 16, 128>}]} {
    %c0 = arith.constant 0 : index
    %c0_0 = arith.constant 0 : index
    %c0_1 = arith.constant 0 : index
    %0 = vector.load %arg2[%c0, %c0_0, %c0_1] : memref<1x16x128xf32, #tpu.memory_space<vmem>>, vector<1x16x128xf32>
    %1 = vector.shape_cast %0 : vector<1x16x128xf32> to vector<16x128xf32>
    %c0_2 = arith.constant 0 : index
    %c0_3 = arith.constant 0 : index
    %c0_4 = arith.constant 0 : index
    %c0_5 = arith.constant 0 : index
    %2 = vector.load %arg3[%c0_2, %c0_3, %c0_4, %c0_5] : memref<1x1x4x128xf32, #tpu.memory_space<vmem>>, vector<1x1x4x128xf32>
    %3 = vector.shape_cast %2 : vector<1x1x4x128xf32> to vector<4x128xf32>
    %4 = vector.extract_strided_slice %3 {offsets = [0, 0], sizes = [2, 128], strides = [1, 1]} : vector<4x128xf32> to vector<2x128xf32>
    %5 = vector.extract_strided_slice %3 {offsets = [2, 0], sizes = [2, 128], strides = [1, 1]} : vector<4x128xf32> to vector<2x128xf32>
    %6 = tpu.concatenate %4, %1, %5 in 0 : vector<2x128xf32>, vector<16x128xf32>, vector<2x128xf32> -> vector<20x128xf32>
    %7 = vector.extract_strided_slice %6 {offsets = [0, 0], sizes = [18, 128], strides = [1, 1]} : vector<20x128xf32> to vector<18x128xf32>
    %c0_6 = arith.constant 0 : index
    %c0_7 = arith.constant 0 : index
    %c0_8 = arith.constant 0 : index
    %8 = vector.load %arg4[%c0_6, %c0_7, %c0_8] : memref<3x128x128xf32, #tpu.memory_space<vmem>>, vector<1x128x128xf32>
    %9 = vector.shape_cast %8 : vector<1x128x128xf32> to vector<128x128xf32>
    %cst = arith.constant dense<0.000000e+00> : vector<18x128xf32>
    %10 = tpu.matmul %7, %9, %cst {dimension_numbers = #tpu.dot_dimension_numbers<[1], [0], [0], [1], [0, 0, 1, 1], [], []>} : vector<18x128xf32>, vector<128x128xf32>, vector<18x128xf32> -> vector<18x128xf32>
    %11 = vector.extract_strided_slice %6 {offsets = [1, 0], sizes = [18, 128], strides = [1, 1]} : vector<20x128xf32> to vector<18x128xf32>
    %c1 = arith.constant 1 : index
    %c0_9 = arith.constant 0 : index
    %c0_10 = arith.constant 0 : index
    %12 = vector.load %arg4[%c1, %c0_9, %c0_10] : memref<3x128x128xf32, #tpu.memory_space<vmem>>, vector<1x128x128xf32>
    %13 = vector.shape_cast %12 : vector<1x128x128xf32> to vector<128x128xf32>
    %cst_11 = arith.constant dense<0.000000e+00> : vector<18x128xf32>
    %14 = tpu.matmul %11, %13, %cst_11 {dimension_numbers = #tpu.dot_dimension_numbers<[1], [0], [0], [1], [0, 0, 1, 1], [], []>} : vector<18x128xf32>, vector<128x128xf32>, vector<18x128xf32> -> vector<18x128xf32>
    %15 = arith.addf %10, %14 : vector<18x128xf32>
    %16 = vector.extract_strided_slice %6 {offsets = [2, 0], sizes = [18, 128], strides = [1, 1]} : vector<20x128xf32> to vector<18x128xf32>
    %c2 = arith.constant 2 : index
    %c0_12 = arith.constant 0 : index
    %c0_13 = arith.constant 0 : index
    %17 = vector.load %arg4[%c2, %c0_12, %c0_13] : memref<3x128x128xf32, #tpu.memory_space<vmem>>, vector<1x128x128xf32>
    %18 = vector.shape_cast %17 : vector<1x128x128xf32> to vector<128x128xf32>
    %cst_14 = arith.constant dense<0.000000e+00> : vector<18x128xf32>
    %19 = tpu.matmul %16, %18, %cst_14 {dimension_numbers = #tpu.dot_dimension_numbers<[1], [0], [0], [1], [0, 0, 1, 1], [], []>} : vector<18x128xf32>, vector<128x128xf32>, vector<18x128xf32> -> vector<18x128xf32>
    %20 = arith.addf %15, %19 : vector<18x128xf32>
    %c0_15 = arith.constant 0 : index
    %c0_16 = arith.constant 0 : index
    %21 = vector.load %arg5[%c0_15, %c0_16] : memref<1x128xf32, #tpu.memory_space<vmem>>, vector<1x128xf32>
    %22 = vector.shape_cast %21 : vector<1x128xf32> to vector<128xf32>
    %23 = vector.shape_cast %22 : vector<128xf32> to vector<1x128xf32>
    %24 = vector.broadcast %23 : vector<1x128xf32> to vector<18x128xf32>
    %25 = arith.addf %20, %24 : vector<18x128xf32>
    %cst_17 = arith.constant 0.000000e+00 : f32
    %26 = vector.broadcast %cst_17 : f32 to vector<18x128xf32>
    %27 = arith.maximumf %25, %26 : vector<18x128xf32>
    %c16_i32 = arith.constant 16 : i32
    %28 = arith.muli %arg1, %c16_i32 : i32
    %c1_i32 = arith.constant 1 : i32
    %29 = arith.subi %28, %c1_i32 : i32
    %30 = tpu.iota {dimensions = array<i32: 0>} : vector<18x1xi32>
    %31 = vector.broadcast %29 : i32 to vector<18x1xi32>
    %32 = arith.addi %31, %30 : vector<18x1xi32>
    %c0_i32 = arith.constant 0 : i32
    %33 = vector.broadcast %c0_i32 : i32 to vector<18x1xi32>
    %34 = arith.cmpi sge, %32, %33 : vector<18x1xi32>
    %c16_i32_18 = arith.constant 16 : i32
    %35 = vector.broadcast %c16_i32_18 : i32 to vector<18x1xi32>
    %36 = arith.cmpi slt, %32, %35 : vector<18x1xi32>
    %37 = arith.andi %34, %36 : vector<18x1xi1>
    %cst_19 = arith.constant 0.000000e+00 : f32
    %38 = vector.shape_cast %37 : vector<18x1xi1> to vector<18x1xi1>
    %39 = vector.broadcast %38 : vector<18x1xi1> to vector<18x128xi1>
    %40 = vector.broadcast %cst_19 : f32 to vector<18x128xf32>
    %41 = arith.select %39, %27, %40 : vector<18x128xi1>, vector<18x128xf32>
    %42 = vector.extract_strided_slice %41 {offsets = [0, 0], sizes = [16, 128], strides = [1, 1]} : vector<18x128xf32> to vector<16x128xf32>
    %c0_20 = arith.constant 0 : index
    %c0_21 = arith.constant 0 : index
    %c0_22 = arith.constant 0 : index
    %43 = vector.load %arg6[%c0_20, %c0_21, %c0_22] : memref<3x128x128xf32, #tpu.memory_space<vmem>>, vector<1x128x128xf32>
    %44 = vector.shape_cast %43 : vector<1x128x128xf32> to vector<128x128xf32>
    %cst_23 = arith.constant dense<0.000000e+00> : vector<16x128xf32>
    %45 = tpu.matmul %42, %44, %cst_23 {dimension_numbers = #tpu.dot_dimension_numbers<[1], [0], [0], [1], [0, 0, 1, 1], [], []>} : vector<16x128xf32>, vector<128x128xf32>, vector<16x128xf32> -> vector<16x128xf32>
    %46 = vector.extract_strided_slice %41 {offsets = [1, 0], sizes = [16, 128], strides = [1, 1]} : vector<18x128xf32> to vector<16x128xf32>
    %c1_24 = arith.constant 1 : index
    %c0_25 = arith.constant 0 : index
    %c0_26 = arith.constant 0 : index
    %47 = vector.load %arg6[%c1_24, %c0_25, %c0_26] : memref<3x128x128xf32, #tpu.memory_space<vmem>>, vector<1x128x128xf32>
    %48 = vector.shape_cast %47 : vector<1x128x128xf32> to vector<128x128xf32>
    %cst_27 = arith.constant dense<0.000000e+00> : vector<16x128xf32>
    %49 = tpu.matmul %46, %48, %cst_27 {dimension_numbers = #tpu.dot_dimension_numbers<[1], [0], [0], [1], [0, 0, 1, 1], [], []>} : vector<16x128xf32>, vector<128x128xf32>, vector<16x128xf32> -> vector<16x128xf32>
    %50 = arith.addf %45, %49 : vector<16x128xf32>
    %51 = vector.extract_strided_slice %41 {offsets = [2, 0], sizes = [16, 128], strides = [1, 1]} : vector<18x128xf32> to vector<16x128xf32>
    %c2_28 = arith.constant 2 : index
    %c0_29 = arith.constant 0 : index
    %c0_30 = arith.constant 0 : index
    %52 = vector.load %arg6[%c2_28, %c0_29, %c0_30] : memref<3x128x128xf32, #tpu.memory_space<vmem>>, vector<1x128x128xf32>
    %53 = vector.shape_cast %52 : vector<1x128x128xf32> to vector<128x128xf32>
    %cst_31 = arith.constant dense<0.000000e+00> : vector<16x128xf32>
    %54 = tpu.matmul %51, %53, %cst_31 {dimension_numbers = #tpu.dot_dimension_numbers<[1], [0], [0], [1], [0, 0, 1, 1], [], []>} : vector<16x128xf32>, vector<128x128xf32>, vector<16x128xf32> -> vector<16x128xf32>
    %55 = arith.addf %50, %54 : vector<16x128xf32>
    %c0_32 = arith.constant 0 : index
    %c0_33 = arith.constant 0 : index
    %56 = vector.load %arg7[%c0_32, %c0_33] : memref<1x128xf32, #tpu.memory_space<vmem>>, vector<1x128xf32>
    %57 = vector.shape_cast %56 : vector<1x128xf32> to vector<128xf32>
    %58 = vector.shape_cast %57 : vector<128xf32> to vector<1x128xf32>
    %59 = vector.broadcast %58 : vector<1x128xf32> to vector<16x128xf32>
    %60 = arith.addf %55, %59 : vector<16x128xf32>
    %61 = arith.addf %60, %1 : vector<16x128xf32>
    %cst_34 = arith.constant 0.000000e+00 : f32
    %62 = vector.broadcast %cst_34 : f32 to vector<16x128xf32>
    %63 = arith.maximumf %61, %62 : vector<16x128xf32>
    %c0_35 = arith.constant 0 : index
    %c0_36 = arith.constant 0 : index
    %c0_37 = arith.constant 0 : index
    %64 = vector.load %arg8[%c0_35, %c0_36, %c0_37] : memref<1x16x128xf32, #tpu.memory_space<vmem>>, vector<1x16x128xf32>
    %65 = vector.shape_cast %64 : vector<1x16x128xf32> to vector<16x128xf32>
    %66 = vector.shape_cast %63 : vector<16x128xf32> to vector<1x16x128xf32>
    tpu.vector_store %arg8[%c0_35, %c0_36, %c0_37], %66 {strides = array<i32>} : memref<1x16x128xf32, #tpu.memory_space<vmem>>, vector<1x16x128xf32>,
    return
  }
  func.func @transform_0(%arg0: i32, %arg1: i32) -> (i32, i32, i32) {
    %c0_i32 = arith.constant 0 : i32
    %c0_i32_0 = arith.constant 0 : i32
    return %arg0, %arg1, %c0_i32 : i32, i32, i32
  }
  func.func @transform_1(%arg0: i32, %arg1: i32) -> (i32, i32, i32, i32) {
    %c0_i32 = arith.constant 0 : i32
    %c0_i32_0 = arith.constant 0 : i32
    %c0_i32_1 = arith.constant 0 : i32
    return %arg0, %arg1, %c0_i32, %c0_i32_0 : i32, i32, i32, i32
  }
  func.func @transform_2(%arg0: i32, %arg1: i32) -> (i32, i32, i32) {
    %c0_i32 = arith.constant 0 : i32
    %c0_i32_0 = arith.constant 0 : i32
    %c0_i32_1 = arith.constant 0 : i32
    %c0_i32_2 = arith.constant 0 : i32
    return %c0_i32, %c0_i32_0, %c0_i32_1 : i32, i32, i32
  }
  func.func @transform_3(%arg0: i32, %arg1: i32) -> (i32, i32) {
    %c0_i32 = arith.constant 0 : i32
    %c0_i32_0 = arith.constant 0 : i32
    %c0_i32_1 = arith.constant 0 : i32
    return %c0_i32, %c0_i32_0 : i32, i32
  }
  func.func @transform_4(%arg0: i32, %arg1: i32) -> (i32, i32, i32) {
    %c0_i32 = arith.constant 0 : i32
    %c0_i32_0 = arith.constant 0 : i32
    %c0_i32_1 = arith.constant 0 : i32
    %c0_i32_2 = arith.constant 0 : i32
    return %c0_i32, %c0_i32_0, %c0_i32_1 : i32, i32, i32
  }
  func.func @transform_5(%arg0: i32, %arg1: i32) -> (i32, i32) {
    %c0_i32 = arith.constant 0 : i32
    %c0_i32_0 = arith.constant 0 : i32
    %c0_i32_1 = arith.constant 0 : i32
    return %c0_i32, %c0_i32_0 : i32, i32
  }
  func.func @transform_6(%arg0: i32, %arg1: i32) -> (i32, i32, i32) {
    %c0_i32 = arith.constant 0 : i32
    %c0_i32_0 = arith.constant 0 : i32
    return %arg0, %arg1, %c0_i32 : i32, i32, i32
  }
}

</mosaic_0001>

<bundles_post_ra>
// kernel: tpu_custom_call.1
= control target key start
LH: loop header
LB: loop body
LE: loop exit
PB: predicated region body
PF: predicated region fallthrough
CT: control target
= control target key end

     0   :  { %s2469_s0 = inlined_call_operand.hbm [shape: f32[2,16,128], index: 0, kind: input, shape index: {}]   ;;  %s2470_s1 = inlined_call_operand.hbm [shape: f32[2,1,4,128], index: 1, kind: input, shape index: {}]   ;;  %s2471_s2 = inlined_call_operand.hbm [shape: f32[3,128,128], index: 2, kind: input, shape index: {}]   ;;  %s2472_s3 = inlined_call_operand.vmem [shape: f32[1,128], index: 3, kind: input, shape index: {}]   ;;  %s2473_s4 = inlined_call_operand.hbm [shape: f32[3,128,128], index: 4, kind: input, shape index: {}]   ;;  %s2474_s5 = inlined_call_operand.vmem [shape: f32[1,128], index: 5, kind: input, shape index: {}]   ;;  %s2475_s6 = inlined_call_operand.hbm [shape: f32[2,16,128], index: 6, kind: output, shape index: {}]  }
   0x1   :  { %2484 = sst [smem:[#allocation19_spill]] %s2469_s0 }
   0x2   :  { %2485 = sst [smem:[#allocation20_spill]] %s2471_s2 }
   0x3   :  { %2486 = sst [smem:[#allocation21_spill]] %s2473_s4 }
   0x4   :  { %11 = vsyncpa [#allocation3], 0 }
   0x5   :  { %13 = vsyncpa [#allocation3 + $0x1], 0 }
   0x6   :  { %14 = vsyncpa [#allocation6], 0 }
   0x7   :  { %16 = vsyncpa [#allocation6 + $0x1], 0 }
   0x8   :  { %17 = vsyncpa [#allocation9], 0 }
   0x9   :  { %18 = vsyncpa [#allocation4], 0 }
   0xa   :  { %20 = vsyncpa [#allocation4 + $0x1], 0  ;;  %s2074_s21 = smov 0   ;;  %s2076_s22 = smov 0  }
   0xb   :  { %s2078_s23 = smov 0   ;;  %s2080_s24 = smov 0  }
   0xc   :  { %s2082_s25 = smov 0   ;;  %s2084_s26 = smov 0  }
   0xd LB: > { %2487 = sst [smem:[#allocation16_spill]] %s2013_s23  ;;  %s2105_s27 = sadd.s32 4294967295, %s2025_s26   ;;  %s2025_s26 = sphi %s2084_s26, %s26_s26   ;;  %s2021_s25 = sphi %s2082_s25, %s2518_s25   ;;  %s2017_s24 = sphi %s2080_s24, %s2517_s24   ;;  %s2013_s23 = sphi %s2078_s23, %s2513_s23   ;;  %s2009_s22 = sphi %s2076_s22, %s2516_s22   ;;  %s2005_s21 = sphi %s2074_s21, %s2515_s21  }
   0xe   : > { %s1183_s28 = sadd.s32 4294967294, %s2025_s26   ;;  %p60_p0 = scmp.ne.s32.totalorder %s2009_s22, %s2005_s21 }
   0xf   : > { %p2476_p1 = scmp.eq.s32.totalorder %s2105_s27, 0  ;;  %p204_p3 = scmp.eq.s32.totalorder %s1183_s28, 1 }
  0x10   : > { %p1184_p5 = scmp.ge.s32.totalorder %s2025_s26, 1  ;;  %p211_p7 = scmp.lt.s32.totalorder %s2025_s26, 3 }
  0x11   : > { %p2114_p4 = por %p2476_p1, %p60_p0  ;;  %p2119_p6 = por %p204_p3, %p60_p0 }
  0x12   : > { %p2124_p8 = pnand %p1184_p5, %p211_p7  ;;  %s2027_s8 = smov [#allocation7]  }
  0x13   : > { %s2488_s29 = scalar_select %p2114_p4, 1, 0 }
  0x14   : > { %s2489_s30 = scalar_select %p2119_p6, 1, 0 }
  0x15   : > { %s2490_s7 = scalar_select %p2124_p8, 1, 0 }
  0x16   : > { %s223_s9 = sshll.u32 %s2027_s8, 4  ;;  %p1734_p9 = pneg %p2124_p8  ;;  %s2128_s9 = int_to_ptr.vmem [resolvable:$true] %s223_s9 }
  0x17   : > { %s2028_s11 = smov [#allocation8]   ;;  %s2492_s2 = sld [smem:[#allocation20_spill]] }
  0x18   : > { %p2135_p11 = pnand %p1734_p9, %p2476_p1  ;;  %s239_s12 = sshll.u32 %s2028_s11, 4  ;;  %s2139_s12 = int_to_ptr.vmem [resolvable:$true] %s239_s12 }
  0x1a   : > { %p1817_p13 = pneg %p2135_p11 }
  0x1d   : > { %s1815_s15 = scalar_lea.hbm %s2492_s2, 6144 }
  0x1e   : > { %p1816_p12 = scmp.ne.s32.totalorder %s2492_s2, %s1815_s15  ;;  %p1822_p5 = scmp.lt.u32.totalorder %s1815_s15, %s2492_s2 }
  0x20   : > { %p1818_p0 = pnand %p1817_p13, %p1816_p12 }
  0x22   : > { %p1819_p3 = pneg %p1818_p0 }
  0x24   : > { %p1824_p7 = pnand %p1822_p5, %p1819_p3 }
  0x26   : > { %1827 = shalt.err (!%p1824_p7)
}
  0x27   : > { %s1828_s20 = scalar_lea.vmem %s2128_s9, 6144  ;;  %p1836_p2 = scmp.lt.s32.totalorder %s2128_s9, %s2128_s9 }
  0x28   : > { %p1829_p9 = scmp.ne.s32.totalorder %s2128_s9, %s1828_s20  ;;  %p1837_p12 = scmp.lt.s32.totalorder %s1828_s20, %s1828_s20 }
  0x2a   : > { %p1831_p10 = pnand %p1829_p9, %p1817_p13  ;;  %p1838_p0 = por %p1837_p12, %p1836_p2 }
  0x2c   : > { %p1832_p1 = pneg %p1831_p10 }
  0x2e   : > { %p1839_p6 = pnand %p1838_p0, %p1832_p1 }
  0x30   : > { %1842 = shalt.err (!%p1839_p6)
}
  0x31   : > { %s2477_s28 = smov 128   ;;  %s2478_s8 = smov 8  }
  0x32   : > { %1737 = dma.hbm_to_vmem [thread:$0]  (!%p2135_p11), %s2492_s2, 6144, %s2128_s9, [#allocation6], %s2477_s28, %s2477_s28, %s2478_s8  }
  0x33   : > { %s2493_s4 = sld [smem:[#allocation21_spill]] }
  0x39   : > { %s1843_s16 = scalar_lea.hbm %s2493_s4, 6144 }
  0x3a   : > { %p1844_p1 = scmp.ne.s32.totalorder %s2493_s4, %s1843_s16  ;;  %p1850_p10 = scmp.lt.u32.totalorder %s1843_s16, %s2493_s4 }
  0x3c   : > { %p1846_p2 = pnand %p1844_p1, %p1817_p13 }
  0x3e   : > { %p1847_p6 = pneg %p1846_p2 }
  0x40   : > { %p1852_p3 = pnand %p1850_p10, %p1847_p6 }
  0x42   : > { %1855 = shalt.err (!%p1852_p3)
}
  0x43   : > { %s1856_s9 = scalar_lea.vmem %s2139_s12, 6144  ;;  %p1864_p12 = scmp.lt.s32.totalorder %s2139_s12, %s2139_s12 }
  0x44   : > { %p1857_p5 = scmp.ne.s32.totalorder %s2139_s12, %s1856_s9  ;;  %p1865_p0 = scmp.lt.s32.totalorder %s1856_s9, %s1856_s9 }
  0x46   : > { %p1859_p7 = pnand %p1857_p5, %p1817_p13  ;;  %p1866_p1 = por %p1865_p0, %p1864_p12 }
  0x48   : > { %p1860_p9 = pneg %p1859_p7 }
  0x4a   : > { %p1867_p2 = pnand %p1866_p1, %p1860_p9 }
  0x4c   : > { %1870 = shalt.err (!%p1867_p2)
}
  0x4d   : > { %1740 = dma.hbm_to_vmem [thread:$0]  (!%p2135_p11), %s2493_s4, 6144, %s2139_s12, [#allocation9], %s2477_s28, %s2477_s28, %s2478_s8  }
  0x4e   : > { %s38_s10 = sadd.s32 1, %s2021_s25  ;;  %s47_s14 = sadd.s32 1, %s2013_s23 }
  0x4f   : > { %p40_p13 = scmp.ge.s32.totalorder %s38_s10, 2  ;;  %p54_p6 = scmp.ne.s32.totalorder %s2013_s23, %s2009_s22 }
  0x50   : > { %p55_p10 = scmp.eq.s32.totalorder %s2025_s26, 0  ;;  %p1754_p3 = scmp.lt.s32.totalorder %s2025_s26, 2 }
  0x51   : > { %s2520_s10 = smov (%p40_p13, %s38_s10), 0  ;;  %p2495_p7 = scmp.eq.s32.totalorder %s2105_s27, 1 }
  0x52   : > { %2494 = sst [smem:[#allocation17_spill]] %s2520_s10  ;;  %p56_p5 = por %p55_p10, %p54_p6 }
  0x53   : > { %p2209_p9 = por %p2495_p7, %p54_p6  ;;  %s42_s16 = ssub.s32 %s2021_s25, %s2520_s10 }
  0x54   : > { %s2216_s17 = sand.u32 1, %s2013_s23   ;;  %p45_p11 = scmp.eq.s32.totalorder %s42_s16, 0 }
  0x55   : > { %s2496_s15 = scalar_select %p2209_p9, 1, 0 }
  0x56   : > { %s1188_s12 = sshll.u32 %s2216_s17, 4  ;;  %s1207_s18 = sshll.u32 %s2021_s25, 8 }
  0x57   : > { %s2221_s19 = scalar_select %p45_p11, %s2013_s23, %s47_s14  }
  0x58   : > { %s2498_s0 = sld [smem:[#allocation19_spill]]  ;;  %s260_s13 = scalar_lea.vmem [#allocation2], %s1188_s12 }
  0x59   : > { %2497 = sst [smem:[#allocation18_spill]] %s2221_s19  ;;  %s269_s28 = sshll.u32 %s260_s13, 4  ;;  %s2234_s28 = int_to_ptr.vmem [resolvable:$true] %s269_s28 }
  0x5a   : > { %p2230_p12 = pnand %p1754_p3, %p56_p5  ;;  %s257_s16 = scalar_lea.sflag [#allocation3], %s2216_s17 }
  0x5c   : > { %p1873_p1 = pneg %p2230_p12 }
  0x5e   : > { %s2226_s11 = scalar_lea.hbm %s2498_s0, %s1207_s18  ;;  %s1876_s9 = scalar_lea.hbm %s2498_s0, 512 }
  0x5f   : > { %s1871_s20 = scalar_lea.hbm %s2226_s11, 256  ;;  %p1877_p6 = scmp.lt.u32.totalorder %s2226_s11, %s2498_s0 }
  0x60   : > { %p1872_p0 = scmp.ne.s32.totalorder %s2226_s11, %s1871_s20  ;;  %p1878_p10 = scmp.lt.u32.totalorder %s1876_s9, %s1871_s20 }
  0x61   : > { %p1880_p5 = scmp.lt.u32.totalorder %s1871_s20, %s2226_s11 }
  0x62   : > { %p1874_p2 = pnand %p1873_p1, %p1872_p0  ;;  %p1879_p3 = por %p1878_p10, %p1877_p6 }
  0x64   : > { %p1875_p13 = pneg %p1874_p2  ;;  %p1881_p7 = por %p1880_p5, %p1879_p3 }
  0x66   : > { %p1882_p11 = pnand %p1881_p7, %p1875_p13 }
  0x68   : > { %1885 = shalt.err (!%p1882_p11)
}
  0x69   : > { %s1886_s14 = scalar_lea.vmem %s2234_s28, 256  ;;  %s2031_s12 = smov [#allocation2]  }
  0x6a   : > { %p1887_p0 = scmp.ne.s32.totalorder %s2234_s28, %s1886_s14  ;;  %s1891_s18 = sshll.u32 %s2031_s12, 4  ;;  %s1892_s18 = int_to_ptr.vmem [resolvable:$false] %s1891_s18 }
  0x6b   : > { %s1893_s2 = scalar_lea.vmem %s1892_s18, 512  ;;  %p1894_p4 = scmp.lt.s32.totalorder %s2234_s28, %s1892_s18 }
  0x6c   : > { %p1889_p2 = pnand %p1887_p0, %p1873_p1  ;;  %p1895_p6 = scmp.lt.s32.totalorder %s1893_s2, %s1886_s14 }
  0x6e   : > { %p1890_p9 = pneg %p1889_p2  ;;  %p1896_p10 = por %p1895_p6, %p1894_p4 }
  0x70   : > { %p1897_p3 = pnand %p1896_p10, %p1890_p9 }
  0x72   : > { %1900 = shalt.err (!%p1897_p3)
}
  0x73   : > { %s2500_s20 = smov 8   ;;  %s2501_s9 = smov 128  }
  0x74   : > { %1744 = dma.hbm_to_vmem [thread:$0]  (!%p2230_p12), %s2226_s11, 256, %s2234_s28, %s257_s16, %s2501_s9, %s2501_s9, %s2500_s20  }
  0x75   : > { %s1191_s13 = sshll.u32 %s2216_s17, 2  ;;  %s1192_s12 = sshll.u32 %s2021_s25, 6 }
  0x76   : > { %s2273_s2 = scalar_lea.hbm %s2470_s1, %s1192_s12  ;;  %s283_s0 = scalar_lea.vmem [#allocation5], %s1191_s13 }
  0x77   : > { %s291_s4 = sshll.u32 %s283_s0, 4  ;;  %s2502_s10 = sand.u32 1, %s2025_s26   ;;  %s292_s4 = int_to_ptr.vmem [resolvable:$true] %s291_s4 }
  0x78   : > { %s280_s19 = scalar_lea.sflag [#allocation6], %s2502_s10  ;;  %s1901_s23 = scalar_lea.hbm %s2273_s2, 64 }
  0x79   : > { %p1902_p4 = scmp.ne.s32.totalorder %s2273_s2, %s1901_s23  ;;  %s1906_s11 = scalar_lea.hbm %s2470_s1, 128 }
  0x7a   : > { %p1907_p5 = scmp.lt.u32.totalorder %s2273_s2, %s2470_s1  ;;  %p1908_p7 = scmp.lt.u32.totalorder %s1906_s11, %s1901_s23 }
  0x7b   : > { %p1904_p9 = pnand %p1902_p4, %p1873_p1  ;;  %p1910_p0 = scmp.lt.u32.totalorder %s1901_s23, %s2273_s2 }
  0x7c   : > { %p1909_p11 = por %p1908_p7, %p1907_p5 }
  0x7d   : > { %p1905_p13 = pneg %p1904_p9 }
  0x7e   : > { %p1911_p2 = por %p1910_p0, %p1909_p11 }
  0x80   : > { %p1912_p6 = pnand %p1911_p2, %p1905_p13 }
  0x82   : > { %1915 = shalt.err (!%p1912_p6)
}
  0x83   : > { %s1916_s0 = scalar_lea.vmem %s292_s4, 64  ;;  %s2032_s10 = smov [#allocation5]  }
  0x84   : > { %p1917_p10 = scmp.ne.s32.totalorder %s292_s4, %s1916_s0  ;;  %s1921_s9 = sshll.u32 %s2032_s10, 4  ;;  %s1922_s9 = int_to_ptr.vmem [resolvable:$false] %s1921_s9 }
  0x85   : > { %s1923_s13 = scalar_lea.vmem %s1922_s9, 128  ;;  %p1924_p9 = scmp.lt.s32.totalorder %s292_s4, %s1922_s9 }
  0x86   : > { %p1919_p3 = pnand %p1917_p10, %p1873_p1  ;;  %p1925_p8 = scmp.lt.s32.totalorder %s1923_s13, %s1916_s0 }
  0x88   : > { %p1920_p4 = pneg %p1919_p3  ;;  %p1926_p5 = por %p1925_p8, %p1924_p9 }
  0x8a   : > { %p1927_p7 = pnand %p1926_p5, %p1920_p4 }
  0x8c   : > { %1930 = shalt.err (!%p1927_p7)
}
  0x8d   : > { %1747 = dma.hbm_to_vmem [thread:$0]  (!%p2230_p12), %s2273_s2, 64, %s292_s4, %s280_s19  }
  0x8e   : > { %p2503_p13 = scmp.ne.s32.totalorder %s2490_s7, 0 }
  0x8f   : > { %s2299_s23 = sand.u32 (!%p2503_p13), 1, %s2009_s22   ;;  %p2504_p8 = scmp.ne.s32.totalorder (!%p2503_p13), %s2488_s29, 0 }
  0x90   : > { %300 = sbr.rel (%p2503_p13) target bundleno = 719 (0x2cf), region = 44  ;;  %s1194_s12 = sshll.u32 (!%p2503_p13), %s2299_s23, 4 }
  0x91   : > { %s303_s14 = scalar_lea.sflag (!%p2503_p13), [#allocation3], %s2299_s23  ;;  %s2305_s18 = scalar_lea.vmem (!%p2503_p13), [#allocation2], %s1194_s12 }
  0x97   : > { %1984 = dma.done.wait (%p2504_p8), %s303_s14, 256  }
  0x98   : > { %1986 = vsyncadd (%p2504_p8), %s303_s14, 4294967040  ;;  %s311_s4 = sand.u32 1, %s2105_s27   ;;  %s1195_s7 = sshll.u32 %s2299_s23, 2 }
  0x99   : > { %s312_s8 = scalar_lea.sflag [#allocation6], %s311_s4  ;;  %s2313_s19 = scalar_lea.vmem [#allocation5], %s1195_s7 }
  0x9a   : > { %1988 = dma.done.wait (%p2504_p8), %s312_s8, 64  }
  0x9b   : > { %1990 = vsyncadd (%p2504_p8), %s312_s8, 4294967232  ;;  %p2505_p12 = scmp.eq.s32.totalorder %s2105_s27, 0 }
  0x9d   : > { %1992 = dma.done.wait (%p2505_p12), [#allocation6], 6144   ;;  %p2506_p1 = pmov %p2505_p12 }
  0x9f   : > { %1994 = vsyncadd (%p2506_p1), [#allocation6], 4294961152  ;;  %p2507_p11 = pmov %p2506_p1 }
  0xa0   : > { %p2508_p0 = pmov %p2506_p1 }
  0xa1   : > { %1996 = dma.done.wait (%p2507_p11), [#allocation9], 6144  }
  0xa2   : > { %1998 = vsyncadd (%p2508_p0), [#allocation9], 4294961152  ;;  %v2033_v0 = vmov 0.0|0.0   ;;  %vm2034_vm0 = vmmov 0   ;;  %v2035_v1 = vmov 0.0   ;;  %v390_v2 = vld [vmem:[#allocation7 + $0x80] sm:$0xff] }
  0xa3   : > { %1548 = vmatprep.subr.bf16.mxu0 %v2033_v0  ;;  %1572 = vmatprep.subr.bf16.mxu1 %v2033_v0  ;;  %v391_v3 = vld [vmem:[#allocation7 + $0x88] sm:$0xff]  ;;  %v373_v4 = vld [vmem:[#allocation7] sm:$0xff]  ;;  %v392_v7 = vld [vmem:[#allocation7 + $0x90] sm:$0xff]  ;;  %vm364_vm1 = vcmask 1041408   ;;  %vm408_vm2 = vcmask 1046528   ;;  %vm594_vm3 = vcmask 1045504  }
  0xa4   : > { %1352 = vmatprep.mubr.msk.f32.mxu0 %vm2034_vm0, %v2035_v1  ;;  %1393 = vmatprep.mubr.msk.f32.mxu1 %vm2034_vm0, %v2035_v1  ;;  %v1549_v5 = vpack.c.bf16 %v391_v3, %v390_v2  ;;  %v374_v6 = vld [vmem:[#allocation7 + $0x8] sm:$0xff]  ;;  %v393_v8 = vld [vmem:[#allocation7 + $0x98] sm:$0xff]  ;;  %v375_v10 = vld [vmem:[#allocation7 + $0x10] sm:$0xff]  ;;  %s356_s17 = scalar_lea.vmem [#allocation10], %s1194_s12  ;;  %s1208_s16 = sshll.u32 %s2017_s24, 8 }
  0xa5   : > { %v1573_v9 = vpack.c.bf16 %v374_v6, %v373_v4  ;;  %v376_v11 = vld [vmem:[#allocation7 + $0x18] sm:$0xff]  ;;  %v1552_v12 = vpack.c.bf16 %v393_v8, %v392_v7  ;;  %v394_v14 = vld [vmem:[#allocation7 + $0xa0] sm:$0xff]  ;;  %v395_v15 = vld [vmem:[#allocation7 + $0xa8] sm:$0xff]  ;;  %s1052_s11 = sshll.u32 %s356_s17, 4  ;;  %s2420_s10 = scalar_lea.hbm %s2475_s6, %s1208_s16  ;;  %s2414_s11 = int_to_ptr.vmem [resolvable:$true] %s1052_s11 }
  0xa6   : > { %1550 = vmatpush3.bf16.msra.mxu0 %v1549_v5  ;;  %v1576_v13 = vpack.c.bf16 %v376_v11, %v375_v10  ;;  %v377_v16 = vld [vmem:[#allocation7 + $0x20] sm:$0xff]  ;;  %v378_v17 = vld [vmem:[#allocation7 + $0x28] sm:$0xff]  ;;  %v1555_v18 = vpack.c.bf16 %v395_v15, %v394_v14  ;;  %v396_v20 = vld [vmem:[#allocation7 + $0xb0] sm:$0xff]  ;;  %s1037_s9 = scalar_lea.sflag [#allocation4], %s2299_s23  ;;  %s1931_s24 = scalar_lea.vmem %s2414_s11, 256 }
  0xa7   : > { %1574 = vmatpush3.bf16.msra.mxu1 %v1573_v9  ;;  %1551 = vmatprep.subr.bf16.mxu0 %v2033_v0  ;;  %v1579_v19 = vpack.c.bf16 %v378_v17, %v377_v16  ;;  %v397_v21 = vld [vmem:[#allocation7 + $0xb8] sm:$0xff]  ;;  %v379_v22 = vld [vmem:[#allocation7 + $0x30] sm:$0xff]  ;;  %v398_v26 = vld [vmem:[#allocation7 + $0xc0] sm:$0xff]  ;;  %p1932_p2 = scmp.ne.s32.totalorder %s2414_s11, %s1931_s24  ;;  %p2509_p6 = scmp.ne.s32.totalorder %s2496_s15, 0 }
  0xa8   : > { %1575 = vmatprep.subr.bf16.mxu1 %v2033_v0  ;;  %v380_v23 = vld [vmem:[#allocation7 + $0x38] sm:$0xff]  ;;  %v1558_v24 = vpack.c.bf16 %v397_v21, %v396_v20  ;;  %v399_v27 = vld [vmem:[#allocation7 + $0xc8] sm:$0xff]  ;;  %v381_v28 = vld [vmem:[#allocation7 + $0x40] sm:$0xff]  ;;  %s2036_s13 = smov [#allocation10]  }
  0xa9   : > { %v1582_v25 = vpack.c.bf16 %v380_v23, %v379_v22  ;;  %v382_v29 = vld [vmem:[#allocation7 + $0x48] sm:$0xff]  ;;  %v1561_v30 = vpack.c.bf16 %v399_v27, %v398_v26  ;;  %v400_v32 = vld [vmem:[#allocation7 + $0xd0] sm:$0xff]  ;;  %v401_v33 = vld [vmem:[#allocation7 + $0xd8] sm:$0xff]  ;;  %p1933_p10 = pnand %p1932_p2, %p2509_p6  ;;  %s1935_s12 = sshll.u32 %s2036_s13, 4  ;;  %s1936_s12 = int_to_ptr.vmem [resolvable:$false] %s1935_s12 }
  0xaa   : > { %1553 = vmatpush3.bf16.msra.mxu0 %v1552_v12  ;;  %v1585_v31 = vpack.c.bf16 %v382_v29, %v381_v28  ;;  %v383_v34 = vld [vmem:[#allocation7 + $0x50] sm:$0xff]  ;;  %v384_v35 = vld [vmem:[#allocation7 + $0x58] sm:$0xff]  ;;  %v1564_v38 = vpack.c.bf16 %v401_v33, %v400_v32  ;;  %v402_v40 = vld [vmem:[#allocation7 + $0xe0] sm:$0xff]  ;;  %s1937_s14 = scalar_lea.vmem %s1936_s12, 512  ;;  %p1938_p4 = scmp.lt.s32.totalorder %s2414_s11, %s1936_s12 }
  0xab   : > { %1577 = vmatpush3.bf16.msra.mxu1 %v1576_v13  ;;  %1554 = vmatprep.subr.bf16.mxu0 %v2033_v0  ;;  %v2342_v36 = vld [vmem:[%s2305_s18] sm:$0xff]  ;;  %v2345_v37 = vld [vmem:[%s2305_s18 + $0x8] sm:$0xff]  ;;  %v1588_v39 = vpack.c.bf16 %v384_v35, %v383_v34  ;;  %p1934_p3 = pneg %p1933_p10  ;;  %p1939_p9 = scmp.lt.s32.totalorder %s1937_s14, %s1931_s24 }
  0xac   : > { %1578 = vmatprep.subr.bf16.mxu1 %v2033_v0  ;;  %v403_v41 = vld [vmem:[#allocation7 + $0xe8] sm:$0xff]  ;;  %v365_v42 = vrot.slane %v2342_v36, 6  ;;  %v366_v43 = vrot.slane %v2345_v37, 6  ;;  %v385_v44 = vld [vmem:[#allocation7 + $0x60] sm:$0xff]  ;;  %v361_v46 = vld [vmem:[%s2313_s19] sm:$0xf] }
  0xad   : > { %v386_v45 = vld [vmem:[#allocation7 + $0x68] sm:$0xff]  ;;  %v1567_v47 = vpack.c.bf16 %v403_v41, %v402_v40  ;;  %v404_v49 = vld [vmem:[#allocation7 + $0xf0] sm:$0xff]  ;;  %v405_v50 = vld [vmem:[#allocation7 + $0xf8] sm:$0xff]  ;;  %p1940_p5 = por %p1939_p9, %p1938_p4 }
  0xae   : > { %1556 = vmatpush3.bf16.msra.mxu0 %v1555_v18  ;;  %v1591_v48 = vpack.c.bf16 %v386_v45, %v385_v44  ;;  %v2354_v51 = vsel %vm364_vm1, %v365_v42, %v366_v43  ;;  %v2357_v52 = vsel %vm364_vm1, %v361_v46, %v365_v42  ;;  %v387_v53 = vld [vmem:[#allocation7 + $0x70] sm:$0xff]  ;;  %v388_v54 = vld [vmem:[#allocation7 + $0x78] sm:$0xff]  ;;  %v1570_v55 = vpack.c.bf16 %v405_v50, %v404_v49  ;;  %v578_v59 = vld [vmem:[#allocation7 + $0x100] sm:$0xff] }
  0xaf   : > { %1580 = vmatpush3.bf16.msra.mxu1 %v1579_v19  ;;  %1557 = vmatprep.subr.bf16.mxu0 %v2033_v0  ;;  %v409_v56 = vrot.slane %v2357_v52, 1  ;;  %v410_v57 = vrot.slane %v2354_v51, 1  ;;  %v1594_v58 = vpack.c.bf16 %v388_v54, %v387_v53  ;;  %v579_v60 = vld [vmem:[#allocation7 + $0x108] sm:$0xff]  ;;  %v2364_v61 = vsel %vm364_vm1, %v366_v43, %v361_v46  ;;  %v580_v3 = vld [vmem:[#allocation7 + $0x110] sm:$0xff]  ;;  %v581_v4 = vld [vmem:[#allocation7 + $0x118] sm:$0xff]  ;;  %p1941_p7 = pnand %p1940_p5, %p1934_p3 }
  0xb0   : > { %1581 = vmatprep.subr.bf16.mxu1 %v2033_v0  ;;  %v1597_v63 = vpack.c.bf16 %v579_v60, %v578_v59  ;;  %v412_v2 = vrot.slane %v2364_v61, 1  ;;  %v1600_v5 = vpack.c.bf16 %v581_v4, %v580_v3  ;;  %v582_v7 = vld [vmem:[#allocation7 + $0x120] sm:$0xff]  ;;  %v583_v8 = vld [vmem:[#allocation7 + $0x128] sm:$0xff]  ;;  %v584_v10 = vld [vmem:[#allocation7 + $0x130] sm:$0xff]  ;;  %v596_v26 = vrot.slane %v2354_v51, 2 }
  0xb1   : > { %v411_v62 = vsel %vm408_vm2, %v409_v56, %v410_v57  ;;  %v1603_v9 = vpack.c.bf16 %v583_v8, %v582_v7  ;;  %v585_v11 = vld [vmem:[#allocation7 + $0x138] sm:$0xff]  ;;  %v586_v13 = vld [vmem:[#allocation7 + $0x140] sm:$0xff]  ;;  %v587_v14 = vld [vmem:[#allocation7 + $0x148] sm:$0xff]  ;;  %v598_v28 = vrot.slane %v2364_v61, 2 }
  0xb2   : > { %1559 = vmatpush3.bf16.msra.mxu0 %v1558_v24  ;;  %v413_v6 = vsel %vm408_vm2, %v410_v57, %v412_v2  ;;  %v1606_v12 = vpack.c.bf16 %v585_v11, %v584_v10  ;;  %v1609_v15 = vpack.c.bf16 %v587_v14, %v586_v13  ;;  %v588_v16 = vld [vmem:[#allocation7 + $0x150] sm:$0xff]  ;;  %v589_v17 = vld [vmem:[#allocation7 + $0x158] sm:$0xff]  ;;  %v590_v19 = vld [vmem:[#allocation7 + $0x160] sm:$0xff] }
  0xb3   : > { %1583 = vmatpush3.bf16.msra.mxu1 %v1582_v25  ;;  %1560 = vmatprep.subr.bf16.mxu0 %v2033_v0  ;;  %v1612_v18 = vpack.c.bf16 %v589_v17, %v588_v16  ;;  %v591_v20 = vld [vmem:[#allocation7 + $0x168] sm:$0xff]  ;;  %v592_v22 = vld [vmem:[#allocation7 + $0x170] sm:$0xff]  ;;  %v593_v23 = vld [vmem:[#allocation7 + $0x178] sm:$0xff]  ;;  %v595_v25 = vrot.slane %v2357_v52, 2  ;;  %v599_v29 = vsel %vm594_vm3, %v596_v26, %v598_v28 }
  0xb4   : > { %1584 = vmatprep.subr.bf16.mxu1 %v2033_v0  ;;  %v1615_v21 = vpack.c.bf16 %v591_v20, %v590_v19  ;;  %v1618_v24 = vpack.c.bf16 %v593_v23, %v592_v22  ;;  %v730_v33 = vld [vmem:[#allocation8 + $0x18] sm:$0xff]  ;;  %v731_v34 = vld [vmem:[#allocation8 + $0x20] sm:$0xff]  ;;  %v745_v40 = vld [vmem:[#allocation8 + $0x88] sm:$0xff] }
  0xb5   : > { %v597_v27 = vsel %vm594_vm3, %v595_v25, %v596_v26  ;;  %v746_v42 = vld [vmem:[#allocation8 + $0x90] sm:$0xff]  ;;  %v747_v43 = vld [vmem:[#allocation8 + $0x98] sm:$0xff]  ;;  %v735_v53 = vld [vmem:[#allocation8 + $0x40] sm:$0xff] }
  0xb6   : > { %1562 = vmatpush3.bf16.msra.mxu0 %v1561_v30  ;;  %v727_v30 = vld [vmem:[#allocation8] sm:$0xff]  ;;  %v1624_v44 = vpack.c.bf16 %v747_v43, %v746_v42  ;;  %v734_v46 = vld [vmem:[#allocation8 + $0x38] sm:$0xff]  ;;  %v750_v50 = vld [vmem:[#allocation8 + $0xb0] sm:$0xff] }
  0xb7   : > { %1586 = vmatpush3.bf16.msra.mxu1 %v1585_v31  ;;  %1563 = vmatprep.subr.bf16.mxu0 %v2033_v0  ;;  %v728_v31 = vld [vmem:[#allocation8 + $0x8] sm:$0xff]  ;;  %v737_v57 = vld [vmem:[#allocation8 + $0x50] sm:$0xff]  ;;  %v739_v60 = vld [vmem:[#allocation8 + $0x60] sm:$0xff] }
  0xb8   : > { %1587 = vmatprep.subr.bf16.mxu1 %v2033_v0  ;;  %v1652_v32 = vpack.c.bf16 %v728_v31, %v727_v30  ;;  %v736_v54 = vld [vmem:[#allocation8 + $0x48] sm:$0xff]  ;;  %v741_v4 = vld [vmem:[#allocation8 + $0x70] sm:$0xff]  ;;  %v755_v8 = vld [vmem:[#allocation8 + $0xd8] sm:$0xff] }
  0xb9   : > { %v1668_v56 = vpack.c.bf16 %v736_v54, %v735_v53  ;;  %v754_v7 = vld [vmem:[#allocation8 + $0xd0] sm:$0xff]  ;;  %v921_v10 = vld [vmem:[#allocation8 + $0x100] sm:$0xff]  ;;  %v922_v11 = vld [vmem:[#allocation8 + $0x108] sm:$0xff] }
  0xba   : > { %1565 = vmatpush3.bf16.msra.mxu0 %v1564_v38  ;;  %v732_v38 = vld [vmem:[#allocation8 + $0x28] sm:$0xff]  ;;  %v756_v13 = vld [vmem:[#allocation8 + $0xe0] sm:$0xff]  ;;  %v758_v16 = vld [vmem:[#allocation8 + $0xf0] sm:$0xff] }
  0xbb   : > { %1589 = vmatpush3.bf16.msra.mxu1 %v1588_v39  ;;  %1566 = vmatprep.subr.bf16.mxu0 %v2033_v0  ;;  %v744_v39 = vld [vmem:[#allocation8 + $0x80] sm:$0xff]  ;;  %v1660_v45 = vpack.c.bf16 %v732_v38, %v731_v34  ;;  %v757_v14 = vld [vmem:[#allocation8 + $0xe8] sm:$0xff]  ;;  %v759_v17 = vld [vmem:[#allocation8 + $0xf8] sm:$0xff] }
  0xbc   : > { %1590 = vmatprep.subr.bf16.mxu1 %v2033_v0  ;;  %v1620_v41 = vpack.c.bf16 %v745_v40, %v744_v39  ;;  %v1199_v38 = vld [vmem:[%s2472_s3] ss:$0 sm:$0xff] }
  0xbe   : > { %1568 = vmatpush3.bf16.msra.mxu0 %v1567_v47  ;;  %v748_v47 = vld [vmem:[#allocation8 + $0xa0] sm:$0xff] }
  0xbf   : > { %1592 = vmatpush3.bf16.msra.mxu1 %v1591_v48  ;;  %1569 = vmatprep.subr.bf16.mxu0 %v2033_v0  ;;  %v749_v48 = vld [vmem:[#allocation8 + $0xa8] sm:$0xff] }
  0xc0   : > { %1593 = vmatprep.subr.bf16.mxu1 %v2033_v0  ;;  %v1628_v49 = vpack.c.bf16 %v749_v48, %v748_v47  ;;  %v923_v47 = vld [vmem:[#allocation8 + $0x110] sm:$0xff]  ;;  %v924_v48 = vld [vmem:[#allocation8 + $0x118] sm:$0xff] }
  0xc2   : > { %1571 = vmatpush3.bf16.msra.mxu0 %v1570_v55 }
  0xc3   : > { %1595 = vmatpush3.bf16.msra.mxu1 %v1594_v58  ;;  %1596 = vmatprep.subr.bf16.mxu0 %v2033_v0  ;;  %v738_v58 = vld [vmem:[#allocation8 + $0x58] sm:$0xff] }
  0xc4   : > { %1653 = vmatprep.subr.bf16.mxu1 %v1652_v32  ;;  %v1672_v59 = vpack.c.bf16 %v738_v58, %v737_v57  ;;  %v925_v58 = vld [vmem:[#allocation8 + $0x120] sm:$0xff] }
  0xc5   : > { %1353 = vmatmul.mubr.f32.vlgmr.msra.gmra.mrb[0].mxu0 %v411_v62 }
  0xc6   : > { %1394 = vmatmul.mubr.f32.vlgmr.msra.gmra.mrb[0].mxu1 %v2357_v52  ;;  %1598 = vmatpush3.bf16.msra.mxu0 %v1597_v63  ;;  %v751_v52 = vld [vmem:[#allocation8 + $0xb8] sm:$0xff]  ;;  %v752_v63 = vld [vmem:[#allocation8 + $0xc0] sm:$0xff] }
  0xc7   : > { %1599 = vmatprep.subr.bf16.mxu0 %v2033_v0  ;;  %1355 = vmatprep.mubr.msk.f32.mxu0 %vm2034_vm0, %v2035_v1  ;;  %v1632_v55 = vpack.c.bf16 %v751_v52, %v750_v50 }
  0xc8   : > { %1396 = vmatprep.mubr.msk.f32.mxu1 %vm2034_vm0, %v2035_v1  ;;  %1655 = vmatpush3.bf16.msra.mxu1 %v1652_v32 }
  0xc9   : > { %1356 = vmatmul.mubr.f32.gmra.mrb[2].mxu0 %v413_v6 }
  0xca   : > { %1601 = vmatpush3.bf16.msra.mxu0 %v1600_v5  ;;  %1397 = vmatmul.mubr.f32.gmra.mrb[2].mxu1 %v2354_v51  ;;  %v742_v5 = vld [vmem:[#allocation8 + $0x78] sm:$0xff] }
  0xcb   : > { %1602 = vmatprep.subr.bf16.mxu0 %v2033_v0  ;;  %1358 = vmatprep.mubr.msk.f32.mxu0 %vm2034_vm0, %v2035_v1  ;;  %v1680_v6 = vpack.c.bf16 %v742_v5, %v741_v4 }
  0xcc   : > { %1399 = vmatprep.mubr.msk.f32.mxu1 %vm2034_vm0, %v2035_v1 }
  0xcd   : > { %1359 = vmatmul.mubr.f32.gmra.mrb[4].mxu0 %v412_v2  ;;  %v753_v2 = vld [vmem:[#allocation8 + $0xc8] sm:$0xff] }
  0xce   : > { %1604 = vmatpush3.bf16.msra.mxu0 %v1603_v9  ;;  %1400 = vmatmul.mubr.f32.gmra.mrb[4].mxu1 %v2364_v61  ;;  %v740_v61 = vld [vmem:[#allocation8 + $0x68] sm:$0xff]  ;;  %v1636_v3 = vpack.c.bf16 %v753_v2, %v752_v63  ;;  %v1640_v9 = vpack.c.bf16 %v755_v8, %v754_v7  ;;  %v928_v7 = vld [vmem:[#allocation8 + $0x138] sm:$0xff] }
  0xcf   : > { %1605 = vmatprep.subr.bf16.mxu0 %v2033_v0  ;;  %1434 = vmatprep.mubr.msk.f32.mxu0 %vm2034_vm0, %v2035_v1  ;;  %v1676_v62 = vpack.c.bf16 %v740_v61, %v739_v60 }
  0xd2   : > { %1607 = vmatpush3.bf16.msra.mxu0 %v1606_v12  ;;  %v1684_v12 = vpack.c.bf16 %v922_v11, %v921_v10 }
  0xd3   : > { %1608 = vmatprep.subr.bf16.mxu0 %v2033_v0 }
  0xd6   : > { %1610 = vmatpush3.bf16.msra.mxu0 %v1609_v15  ;;  %v1644_v15 = vpack.c.bf16 %v757_v14, %v756_v13  ;;  %v930_v14 = vld [vmem:[#allocation8 + $0x148] sm:$0xff] }
  0xd7   : > { %1611 = vmatprep.subr.bf16.mxu0 %v2033_v0 }
  0xda   : > { %1613 = vmatpush3.bf16.msra.mxu0 %v1612_v18  ;;  %v1648_v18 = vpack.c.bf16 %v759_v17, %v758_v16  ;;  %v931_v17 = vld [vmem:[#allocation8 + $0x150] sm:$0xff] }
  0xdb   : > { %1614 = vmatprep.subr.bf16.mxu0 %v2033_v0 }
  0xde   : > { %1616 = vmatpush3.bf16.msra.mxu0 %v1615_v21 }
  0xdf   : > { %1617 = vmatprep.subr.bf16.mxu0 %v2033_v0  ;;  %v729_v0 = vld [vmem:[#allocation8 + $0x10] sm:$0xff] }
  0xe0   : > { %v1656_v35 = vpack.c.bf16 %v730_v33, %v729_v0  ;;  %v701_v33 = vlaneseq }
  0xe2   : > { %1619 = vmatpush3.bf16.msra.mxu0 %v1618_v24  ;;  %1657 = vmatprep.subr.bf16.mxu1 %v1656_v35  ;;  %v702_v34 = vshrl.u32 %v701_v33, 7 }
  0xe3   : > { %1621 = vmatprep.subr.bf16.mxu0 %v1620_v41  ;;  %1659 = vmatpush3.bf16.msra.mxu1 %v1656_v35 }
  0xe4   : > { %1661 = vmatprep.subr.bf16.mxu1 %v1660_v45  ;;  %v706_v39 = vadd.s32 4294967295, %v702_v34 }
  0xe5   : > { %1435 = vmatmul.mubr.f32.vlgmr.msra.gmra.mrb[6].mxu0 %v597_v27 }
  0xe6   : > { %1437 = vmatprep.mubr.msk.f32.mxu0 %vm2034_vm0, %v2035_v1  ;;  %1623 = vmatpush3.bf16.msra.mxu0 %v1620_v41  ;;  %vm709_vm4 = vcmp.ge.s32.totalorder %v706_v39, 0 }
  0xe7   : > { %1625 = vmatprep.subr.bf16.mxu0 %v1624_v44  ;;  %1663 = vmatpush3.bf16.msra.mxu1 %v1660_v45 }
  0xe9   : > { %1438 = vmatmul.mubr.f32.gmra.mrb[8].mxu0 %v599_v29 }
  0xea   : > { %1440 = vmatprep.mubr.msk.f32.mxu0 %vm2034_vm0, %v2035_v1  ;;  %v733_v1 = vld [vmem:[#allocation8 + $0x30] sm:$0xff]  ;;  %1627 = vmatpush3.bf16.msra.mxu0 %v1624_v44  ;;  %v704_v44 = vadd.s32 16, %v702_v34 }
  0xeb   : > { %v1664_v51 = vpack.c.bf16 %v734_v46, %v733_v1  ;;  %1629 = vmatprep.subr.bf16.mxu0 %v1628_v49 }
  0xec   : > { %v708_v52 = vadd.s32 4294967295, %v704_v44 }
  0xed   : > { %1441 = vmatmul.mubr.f32.gmra.mrb[10].mxu0 %v598_v28  ;;  %1665 = vmatprep.subr.bf16.mxu1 %v1664_v51 }
  0xee   : > { %1631 = vmatpush3.bf16.msra.mxu0 %v1628_v49  ;;  %1667 = vmatpush3.bf16.msra.mxu1 %v1664_v51  ;;  %vm714_vm5 = vcmp.lt.s32.totalorder %v708_v52, 16 }
  0xef   : > { %1633 = vmatprep.subr.bf16.mxu0 %v1632_v55  ;;  %1669 = vmatprep.subr.bf16.mxu1 %v1668_v56 }
  0xf2   : > { %1635 = vmatpush3.bf16.msra.mxu0 %v1632_v55  ;;  %1671 = vmatpush3.bf16.msra.mxu1 %v1668_v56  ;;  %v1688_v55 = vpack.c.bf16 %v924_v48, %v923_v47 }
  0xf3   : > { %1673 = vmatprep.subr.bf16.mxu1 %v1672_v59  ;;  %1637 = vmatprep.subr.bf16.mxu0 %v1636_v3 }
  0xf6   : > { %1675 = vmatpush3.bf16.msra.mxu1 %v1672_v59  ;;  %1639 = vmatpush3.bf16.msra.mxu0 %v1636_v3  ;;  %v926_v59 = vld [vmem:[#allocation8 + $0x128] sm:$0xff] }
  0xf7   : > { %1677 = vmatprep.subr.bf16.mxu1 %v1676_v62  ;;  %1641 = vmatprep.subr.bf16.mxu0 %v1640_v9  ;;  %v1692_v5 = vpack.c.bf16 %v926_v59, %v925_v58 }
  0xfa   : > { %1679 = vmatpush3.bf16.msra.mxu1 %v1676_v62  ;;  %1643 = vmatpush3.bf16.msra.mxu0 %v1640_v9 }
  0xfb   : > { %1681 = vmatprep.subr.bf16.mxu1 %v1680_v6  ;;  %1645 = vmatprep.subr.bf16.mxu0 %v1644_v15 }
  0xfe   : > { %1683 = vmatpush3.bf16.msra.mxu1 %v1680_v6  ;;  %1647 = vmatpush3.bf16.msra.mxu0 %v1644_v15  ;;  %v927_v6 = vld [vmem:[#allocation8 + $0x130] sm:$0xff] }
  0xff   : > { %1685 = vmatprep.subr.bf16.mxu1 %v1684_v12  ;;  %1649 = vmatprep.subr.bf16.mxu0 %v1648_v18  ;;  %v1696_v11 = vpack.c.bf16 %v928_v7, %v927_v6 }
 0x102   : > { %1651 = vmatpush3.bf16.msra.mxu0 %v1648_v18  ;;  %v932_v18 = vld [vmem:[#allocation8 + $0x158] sm:$0xff] }
 0x198   : > { %v483_v19 = vpop.f32.mrb[0].mxu0 }
 0x199   : > { %v1354_v20 = vpop.f32.mrb[1].mxu0  ;;  %v563_v21 = vpop.f32.mrb[0].mxu1 }
 0x19a   : > { %v564_v22 = vadd.f32 %v563_v21, %v483_v19  ;;  %v1395_v23 = vpop.f32.mrb[1].mxu1  ;;  %v1704_v19 = vpack.c.bf16 %v932_v18, %v931_v17  ;;  %v933_v20 = vld [vmem:[#allocation8 + $0x160] sm:$0xff]  ;;  %v934_v21 = vld [vmem:[#allocation8 + $0x168] sm:$0xff] }
 0x19b   : > { %v935_v23 = vld [vmem:[#allocation8 + $0x170] sm:$0xff] }
 0x19c   : > { %v488_v24 = vpop.f32.mrb[2].mxu0 }
 0x19d   : > { %v1357_v25 = vpop.f32.mrb[3].mxu0  ;;  %v568_v26 = vpop.f32.mrb[2].mxu1 }
 0x19e   : > { %v569_v27 = vadd.f32 %v568_v26, %v488_v24  ;;  %v1398_v28 = vpop.f32.mrb[3].mxu1  ;;  %v936_v24 = vld [vmem:[#allocation8 + $0x178] sm:$0xff] }
 0x19f   : > { %v1712_v25 = vpack.c.bf16 %v936_v24, %v935_v23 }
 0x1a0   : > { %v493_v29 = vpop.f32.mrb[4].mxu0 }
 0x1a1   : > { %v1360_v30 = vpop.f32.mrb[5].mxu0  ;;  %v573_v31 = vpop.f32.mrb[4].mxu1 }
 0x1a2   : > { %v574_v0 = vadd.f32 %v573_v31, %v493_v29  ;;  %v1401_v32 = vpop.f32.mrb[5].mxu1  ;;  %v1201_v29 = vld [vmem:[%s2474_s5] ss:$0 sm:$0xff] }
 0x1b8   : > { %v669_v35 = vpop.f32.mrb[6].mxu0 }
 0x1b9   : > { %v683_v40 = vadd.f32 %v669_v35, %v564_v22  ;;  %v1436_v41 = vpop.f32.mrb[7].mxu0  ;;  %v1708_v22 = vpack.c.bf16 %v934_v21, %v933_v20 }
 0x1bb   : > { %v693_v42 = vadd.f32 %v1199_v38, %v683_v40 }
 0x1bc   : > { %v674_v43 = vpop.f32.mrb[8].mxu0 }
 0x1bd   : > { %v696_v45 = vmax.f32 %v693_v42, 0.0  ;;  %v684_v1 = vadd.f32 %v674_v43, %v569_v27  ;;  %v1439_v46 = vpop.f32.mrb[9].mxu0 }
 0x1bf   : > { %v694_v49 = vadd.f32 %v1199_v38, %v684_v1  ;;  %v724_v50 = vsel %vm709_vm4, %v696_v45, 0.0  ;;  %1510 = vmatprep.mubr.msk.f32.mxu1 %vm709_vm4, %v696_v45 }
 0x1c0   : > { %v679_v51 = vpop.f32.mrb[10].mxu0  ;;  %v763_v57 = vrot.slane %v724_v50, 1  ;;  %v937_v60 = vrot.slane %v724_v50, 2 }
 0x1c1   : > { %v697_v53 = vmax.f32 %v694_v49, 0.0  ;;  %v685_v54 = vadd.f32 %v679_v51, %v574_v0  ;;  %v1442_v56 = vpop.f32.mrb[11].mxu0 }
 0x1c3   : > { %v695_v61 = vadd.f32 %v1199_v38, %v685_v54  ;;  %1511 = vmatmul.mubr.f32.vlgmr.msra.gmra.mrb[6].mxu1 %v697_v53  ;;  %v764_v62 = vrot.slane %v697_v53, 1  ;;  %v938_v63 = vrot.slane %v697_v53, 2 }
 0x1c4   : > { %1687 = vmatpush3.bf16.msra.mxu1 %v1684_v12  ;;  %v929_v12 = vld [vmem:[#allocation8 + $0x140] sm:$0xff] }
 0x1c5   : > { %v698_v2 = vmax.f32 %v695_v61, 0.0  ;;  %v765_v3 = vsel %vm408_vm2, %v763_v57, %v764_v62  ;;  %1689 = vmatprep.subr.bf16.mxu1 %v1688_v55  ;;  %v939_v4 = vsel %vm594_vm3, %v937_v60, %v938_v63  ;;  %v1700_v16 = vpack.c.bf16 %v930_v14, %v929_v12 }
 0x1c6   : > { %1475 = vmatprep.mubr.f32.mxu0 %v765_v3  ;;  %1545 = vmatprep.mubr.f32.mxu1 %v939_v4 }
 0x1c7   : > { %v726_v8 = vsel %vm714_vm5, %v698_v2, 0.0 }
 0x1c8   : > { %v766_v9 = vrot.slane %v726_v8, 1  ;;  %v940_v10 = vrot.slane %v726_v8, 2  ;;  %1691 = vmatpush3.bf16.msra.mxu1 %v1688_v55 }
 0x1c9   : > { %1693 = vmatprep.subr.bf16.mxu1 %v1692_v5 }
 0x1ca   : > { %v767_v13 = vsel %vm408_vm2, %v764_v62, %v766_v9  ;;  %v941_v15 = vsel %vm594_vm3, %v938_v63, %v940_v10 }
 0x1cb   : > { %1476 = vmatmul.mubr.f32.vlgmr.msra.gmra.mrb[12].mxu0 %v767_v13 }
 0x1cc   : > { %1695 = vmatpush3.bf16.msra.mxu1 %v1692_v5 }
 0x1cd   : > { %1697 = vmatprep.subr.bf16.mxu1 %v1696_v11 }
 0x1d0   : > { %1699 = vmatpush3.bf16.msra.mxu1 %v1696_v11 }
 0x1d1   : > { %1701 = vmatprep.subr.bf16.mxu1 %v1700_v16 }
 0x1d4   : > { %1703 = vmatpush3.bf16.msra.mxu1 %v1700_v16 }
 0x1d5   : > { %1705 = vmatprep.subr.bf16.mxu1 %v1704_v19 }
 0x1d8   : > { %1707 = vmatpush3.bf16.msra.mxu1 %v1704_v19 }
 0x1d9   : > { %1709 = vmatprep.subr.bf16.mxu1 %v1708_v22 }
 0x1dc   : > { %1711 = vmatpush3.bf16.msra.mxu1 %v1708_v22 }
 0x1dd   : > { %1713 = vmatprep.subr.bf16.mxu1 %v1712_v25 }
 0x1e0   : > { %1715 = vmatpush3.bf16.msra.mxu1 %v1712_v25 }
 0x1e3   : > { %1546 = vmatmul.mubr.f32.vlgmr.msra.gmra.mrb[6].mxu1 %v941_v15 }
 0x29e   : > { %v1477_v26 = vpop.f32.mrb[12].mxu0 }
 0x29f   : > { %v836_v27 = vpop.f32.mrb[13].mxu0 }
 0x2b6   : > { %v1547_v28 = vpop.f32.mrb[6].mxu1 }
 0x2b7   : > { %v1716_v30 = vadd.f32 %v1547_v28, %v1477_v26  ;;  %v1010_v31 = vpop.f32.mrb[7].mxu1 }
 0x2b8   : > { %v1717_v0 = vadd.f32 %v1010_v31, %v836_v27 }
 0x2b9   : > { %v1029_v32 = vadd.f32 %v1716_v30, %v1201_v29 }
 0x2ba   : > { %v1028_v33 = vadd.f32 %v1717_v0, %v1201_v29 }
 0x2bb   : > { %v1031_v34 = vadd.f32 %v1029_v32, %v2345_v37 }
 0x2bc   : > { %v1030_v35 = vadd.f32 %v1028_v33, %v2342_v36 }
 0x2bd   : > { %v1033_v38 = vmax.f32 %v1031_v34, 0.0 }
 0x2be   : > { %v1032_v39 = vmax.f32 %v1030_v35, 0.0 }
 0x2bf   : > { %1035 = vst [vmem:[%s356_s17 + $0x8] sm:$0xff] %v1033_v38 }
 0x2c0   : > { %1034 = vst [vmem:[%s356_s17] sm:$0xff] %v1032_v39 }
 0x2c1   : > { %1944 = shalt.err (!%p1941_p7)
}
 0x2c2   : > { %s1945_s18 = scalar_lea.hbm %s2420_s10, 256  ;;  %s1949_s8 = scalar_lea.hbm %s2475_s6, 512 }
 0x2c3   : > { %p1946_p13 = scmp.ne.s32.totalorder %s2420_s10, %s1945_s18  ;;  %p1950_p1 = scmp.lt.u32.totalorder %s2420_s10, %s2475_s6 }
 0x2c4   : > { %p1951_p11 = scmp.lt.u32.totalorder %s1949_s8, %s1945_s18  ;;  %p1953_p2 = scmp.lt.u32.totalorder %s1945_s18, %s2420_s10 }
 0x2c5   : > { %p1947_p8 = pnand %p1946_p13, %p2509_p6 }
 0x2c6   : > { %p1952_p0 = por %p1951_p11, %p1950_p1 }
 0x2c7   : > { %p1948_p12 = pneg %p1947_p8 }
 0x2c8   : > { %p1954_p10 = por %p1953_p2, %p1952_p0 }
 0x2ca   : > { %p1955_p3 = pnand %p1954_p10, %p1948_p12 }
 0x2cc   : > { %1958 = shalt.err (!%p1955_p3)
}
 0x2cd   : > { %s2037_s29 = smov 128   ;;  %s2038_s2 = smov 8  }
 0x2ce   : > { %1732 = dma.vmem_to_hbm [thread:$0]  (%p2509_p6), %s2414_s11, 256, %s2420_s10, %s1037_s9, %s2037_s29, %s2037_s29, %s2038_s2  }
 0x2cf PF: > { %s1067_s28 = sand.u32 1, %s2005_s21   ;;  %p2510_p4 = scmp.ne.s32.totalorder %s2489_s30, 0 }
 0x2d0   : > { %p2511_p9 = scmp.ge.s32.totalorder %s2025_s26, 2  ;;  %s1068_s17 = scalar_lea.sflag [#allocation4], %s1067_s28 }
 0x2d2   : > { %p1749_p5 = pnand %p2511_p9, %p2510_p4 }
 0x2d4   : > { %2000 = dma.done.wait (!%p1749_p5), %s1068_s17, 256  }
 0x2d5   : > { %2002 = vsyncadd (!%p1749_p5), %s1068_s17, 4294967040  ;;  %s26_s26 = sadd.s32 1, %s2025_s26   ;;  %s2512_s16 = sld [smem:[#allocation16_spill]] }
 0x2d6   : > { %p23_p7 = scmp.ge.s32.totalorder %s26_s26, 4   ;;  %s2513_s23 = sld [smem:[#allocation18_spill]] }
 0x2d7   : > { %s2514_s15 = sld [smem:[#allocation17_spill]]  ;;  %s2515_s21 = smov %s2009_s22 }
 0x2d8   : > { %s2517_s24 = smov %s2021_s25  ;;  %25 = sbr.rel (!%p23_p7) target bundleno = 13 (0xd), region = 114 }
 0x2db   : > { %s2516_s22 = smov %s2512_s16 }
 0x2dd   : > { %s2518_s25 = smov %s2514_s15 }
 0x2df   :  { %1073 = vsyncpa [#allocation3], 1 }
 0x2e0   :  { %1075 = vsyncpa [#allocation3 + $0x1], 1 }
 0x2e1   :  { %1076 = vsyncpa [#allocation6], 1 }
 0x2e2   :  { %1078 = vsyncpa [#allocation6 + $0x1], 1 }
 0x2e3   :  { %1079 = vsyncpa [#allocation9], 1 }
 0x2e4   :  { %1080 = vsyncpa [#allocation4], 1 }
 0x2e5   :  { %1082 = vsyncpa [#allocation4 + $0x1], 1 }

// kernel: tpu_custom_call.1
= control target key start
LH: loop header
LB: loop body
LE: loop exit
PB: predicated region body
PF: predicated region fallthrough
CT: control target
= control target key end

     0   :  { %s2469_s0 = inlined_call_operand.hbm [shape: f32[2,16,128], index: 0, kind: input, shape index: {}]   ;;  %s2470_s1 = inlined_call_operand.hbm [shape: f32[2,1,4,128], index: 1, kind: input, shape index: {}]   ;;  %s2471_s2 = inlined_call_operand.hbm [shape: f32[3,128,128], index: 2, kind: input, shape index: {}]   ;;  %s2472_s3 = inlined_call_operand.vmem [shape: f32[1,128], index: 3, kind: input, shape index: {}]   ;;  %s2473_s4 = inlined_call_operand.hbm [shape: f32[3,128,128], index: 4, kind: input, shape index: {}]   ;;  %s2474_s5 = inlined_call_operand.vmem [shape: f32[1,128], index: 5, kind: input, shape index: {}]   ;;  %s2475_s6 = inlined_call_operand.hbm [shape: f32[2,16,128], index: 6, kind: output, shape index: {}]  }
   0x1   :  { %2484 = sst [smem:[#allocation19_spill]] %s2469_s0 }
   0x2   :  { %2485 = sst [smem:[#allocation20_spill]] %s2471_s2 }
   0x3   :  { %2486 = sst [smem:[#allocation21_spill]] %s2473_s4 }
   0x4   :  { %11 = vsyncpa [#allocation3], 0 }
   0x5   :  { %13 = vsyncpa [#allocation3 + $0x1], 0 }
   0x6   :  { %14 = vsyncpa [#allocation6], 0 }
   0x7   :  { %16 = vsyncpa [#allocation6 + $0x1], 0 }
   0x8   :  { %17 = vsyncpa [#allocation9], 0 }
   0x9   :  { %18 = vsyncpa [#allocation4], 0 }
   0xa   :  { %20 = vsyncpa [#allocation4 + $0x1], 0  ;;  %s2074_s21 = smov 0   ;;  %s2076_s22 = smov 0  }
   0xb   :  { %s2078_s23 = smov 0   ;;  %s2080_s24 = smov 0  }
   0xc   :  { %s2082_s25 = smov 0   ;;  %s2084_s26 = smov 0  }
   0xd LB: > { %2487 = sst [smem:[#allocation16_spill]] %s2013_s23  ;;  %s2105_s27 = sadd.s32 4294967295, %s2025_s26   ;;  %s2025_s26 = sphi %s2084_s26, %s26_s26   ;;  %s2021_s25 = sphi %s2082_s25, %s2518_s25   ;;  %s2017_s24 = sphi %s2080_s24, %s2517_s24   ;;  %s2013_s23 = sphi %s2078_s23, %s2513_s23   ;;  %s2009_s22 = sphi %s2076_s22, %s2516_s22   ;;  %s2005_s21 = sphi %s2074_s21, %s2515_s21  }
   0xe   : > { %s1183_s28 = sadd.s32 4294967294, %s2025_s26   ;;  %p60_p0 = scmp.ne.s32.totalorder %s2009_s22, %s2005_s21 }
   0xf   : > { %p2476_p1 = scmp.eq.s32.totalorder %s2105_s27, 0  ;;  %p204_p3 = scmp.eq.s32.totalorder %s1183_s28, 1 }
  0x10   : > { %p1184_p5 = scmp.ge.s32.totalorder %s2025_s26, 1  ;;  %p211_p7 = scmp.lt.s32.totalorder %s2025_s26, 3 }
  0x11   : > { %p2114_p4 = por %p2476_p1, %p60_p0  ;;  %p2119_p6 = por %p204_p3, %p60_p0 }
  0x12   : > { %p2124_p8 = pnand %p1184_p5, %p211_p7  ;;  %s2027_s8 = smov [#allocation7]  }
  0x13   : > { %s2488_s29 = scalar_select %p2114_p4, 1, 0 }
  0x14   : > { %s2489_s30 = scalar_select %p2119_p6, 1, 0 }
  0x15   : > { %s2490_s7 = scalar_select %p2124_p8, 1, 0 }
  0x16   : > { %s223_s9 = sshll.u32 %s2027_s8, 4  ;;  %p1734_p9 = pneg %p2124_p8  ;;  %s2128_s9 = int_to_ptr.vmem [resolvable:$true] %s223_s9 }
  0x17   : > { %s2028_s11 = smov [#allocation8]   ;;  %s2492_s2 = sld [smem:[#allocation20_spill]] }
  0x18   : > { %p2135_p11 = pnand %p1734_p9, %p2476_p1  ;;  %s239_s12 = sshll.u32 %s2028_s11, 4  ;;  %s2139_s12 = int_to_ptr.vmem [resolvable:$true] %s239_s12 }
  0x1a   : > { %p1817_p13 = pneg %p2135_p11 }
  0x1d   : > { %s1815_s15 = scalar_lea.hbm %s2492_s2, 6144 }
  0x1e   : > { %p1816_p12 = scmp.ne.s32.totalorder %s2492_s2, %s1815_s15  ;;  %p1822_p5 = scmp.lt.u32.totalorder %s1815_s15, %s2492_s2 }
  0x20   : > { %p1818_p0 = pnand %p1817_p13, %p1816_p12 }
  0x22   : > { %p1819_p3 = pneg %p1818_p0 }
  0x24   : > { %p1824_p7 = pnand %p1822_p5, %p1819_p3 }
  0x26   : > { %1827 = shalt.err (!%p1824_p7)
}
  0x27   : > { %s1828_s20 = scalar_lea.vmem %s2128_s9, 6144  ;;  %p1836_p2 = scmp.lt.s32.totalorder %s2128_s9, %s2128_s9 }
  0x28   : > { %p1829_p9 = scmp.ne.s32.totalorder %s2128_s9, %s1828_s20  ;;  %p1837_p12 = scmp.lt.s32.totalorder %s1828_s20, %s1828_s20 }
  0x2a   : > { %p1831_p10 = pnand %p1829_p9, %p1817_p13  ;;  %p1838_p0 = por %p1837_p12, %p1836_p2 }
  0x2c   : > { %p1832_p1 = pneg %p1831_p10 }
  0x2e   : > { %p1839_p6 = pnand %p1838_p0, %p1832_p1 }
  0x30   : > { %1842 = shalt.err (!%p1839_p6)
}
  0x31   : > { %s2477_s28 = smov 128   ;;  %s2478_s8 = smov 8  }
  0x32   : > { %1737 = dma.hbm_to_vmem [thread:$0]  (!%p2135_p11), %s2492_s2, 6144, %s2128_s9, [#allocation6], %s2477_s28, %s2477_s28, %s2478_s8  }
  0x33   : > { %s2493_s4 = sld [smem:[#allocation21_spill]] }
  0x39   : > { %s1843_s16 = scalar_lea.hbm %s2493_s4, 6144 }
  0x3a   : > { %p1844_p1 = scmp.ne.s32.totalorder %s2493_s4, %s1843_s16  ;;  %p1850_p10 = scmp.lt.u32.totalorder %s1843_s16, %s2493_s4 }
  0x3c   : > { %p1846_p2 = pnand %p1844_p1, %p1817_p13 }
  0x3e   : > { %p1847_p6 = pneg %p1846_p2 }
  0x40   : > { %p1852_p3 = pnand %p1850_p10, %p1847_p6 }
  0x42   : > { %1855 = shalt.err (!%p1852_p3)
}
  0x43   : > { %s1856_s9 = scalar_lea.vmem %s2139_s12, 6144  ;;  %p1864_p12 = scmp.lt.s32.totalorder %s2139_s12, %s2139_s12 }
  0x44   : > { %p1857_p5 = scmp.ne.s32.totalorder %s2139_s12, %s1856_s9  ;;  %p1865_p0 = scmp.lt.s32.totalorder %s1856_s9, %s1856_s9 }
  0x46   : > { %p1859_p7 = pnand %p1857_p5, %p1817_p13  ;;  %p1866_p1 = por %p1865_p0, %p1864_p12 }
  0x48   : > { %p1860_p9 = pneg %p1859_p7 }
  0x4a   : > { %p1867_p2 = pnand %p1866_p1, %p1860_p9 }
  0x4c   : > { %1870 = shalt.err (!%p1867_p2)
}
  0x4d   : > { %1740 = dma.hbm_to_vmem [thread:$0]  (!%p2135_p11), %s2493_s4, 6144, %s2139_s12, [#allocation9], %s2477_s28, %s2477_s28, %s2478_s8  }
  0x4e   : > { %s38_s10 = sadd.s32 1, %s2021_s25  ;;  %s47_s14 = sadd.s32 1, %s2013_s23 }
  0x4f   : > { %p40_p13 = scmp.ge.s32.totalorder %s38_s10, 2  ;;  %p54_p6 = scmp.ne.s32.totalorder %s2013_s23, %s2009_s22 }
  0x50   : > { %p55_p10 = scmp.eq.s32.totalorder %s2025_s26, 0  ;;  %p1754_p3 = scmp.lt.s32.totalorder %s2025_s26, 2 }
  0x51   : > { %s2520_s10 = smov (%p40_p13, %s38_s10), 0  ;;  %p2495_p7 = scmp.eq.s32.totalorder %s2105_s27, 1 }
  0x52   : > { %2494 = sst [smem:[#allocation17_spill]] %s2520_s10  ;;  %p56_p5 = por %p55_p10, %p54_p6 }
  0x53   : > { %p2209_p9 = por %p2495_p7, %p54_p6  ;;  %s42_s16 = ssub.s32 %s2021_s25, %s2520_s10 }
  0x54   : > { %s2216_s17 = sand.u32 1, %s2013_s23   ;;  %p45_p11 = scmp.eq.s32.totalorder %s42_s16, 0 }
  0x55   : > { %s2496_s15 = scalar_select %p2209_p9, 1, 0 }
  0x56   : > { %s1188_s12 = sshll.u32 %s2216_s17, 4  ;;  %s1207_s18 = sshll.u32 %s2021_s25, 8 }
  0x57   : > { %s2221_s19 = scalar_select %p45_p11, %s2013_s23, %s47_s14  }
  0x58   : > { %s2498_s0 = sld [smem:[#allocation19_spill]]  ;;  %s260_s13 = scalar_lea.vmem [#allocation2], %s1188_s12 }
  0x59   : > { %2497 = sst [smem:[#allocation18_spill]] %s2221_s19  ;;  %s269_s28 = sshll.u32 %s260_s13, 4  ;;  %s2234_s28 = int_to_ptr.vmem [resolvable:$true] %s269_s28 }
  0x5a   : > { %p2230_p12 = pnand %p1754_p3, %p56_p5  ;;  %s257_s16 = scalar_lea.sflag [#allocation3], %s2216_s17 }
  0x5c   : > { %p1873_p1 = pneg %p2230_p12 }
  0x5e   : > { %s2226_s11 = scalar_lea.hbm %s2498_s0, %s1207_s18  ;;  %s1876_s9 = scalar_lea.hbm %s2498_s0, 512 }
  0x5f   : > { %s1871_s20 = scalar_lea.hbm %s2226_s11, 256  ;;  %p1877_p6 = scmp.lt.u32.totalorder %s2226_s11, %s2498_s0 }
  0x60   : > { %p1872_p0 = scmp.ne.s32.totalorder %s2226_s11, %s1871_s20  ;;  %p1878_p10 = scmp.lt.u32.totalorder %s1876_s9, %s1871_s20 }
  0x61   : > { %p1880_p5 = scmp.lt.u32.totalorder %s1871_s20, %s2226_s11 }
  0x62   : > { %p1874_p2 = pnand %p1873_p1, %p1872_p0  ;;  %p1879_p3 = por %p1878_p10, %p1877_p6 }
  0x64   : > { %p1875_p13 = pneg %p1874_p2  ;;  %p1881_p7 = por %p1880_p5, %p1879_p3 }
  0x66   : > { %p1882_p11 = pnand %p1881_p7, %p1875_p13 }
  0x68   : > { %1885 = shalt.err (!%p1882_p11)
}
  0x69   : > { %s1886_s14 = scalar_lea.vmem %s2234_s28, 256  ;;  %s2031_s12 = smov [#allocation2]  }
  0x6a   : > { %p1887_p0 = scmp.ne.s32.totalorder %s2234_s28, %s1886_s14  ;;  %s1891_s18 = sshll.u32 %s2031_s12, 4  ;;  %s1892_s18 = int_to_ptr.vmem [resolvable:$false] %s1891_s18 }
  0x6b   : > { %s1893_s2 = scalar_lea.vmem %s1892_s18, 512  ;;  %p1894_p4 = scmp.lt.s32.totalorder %s2234_s28, %s1892_s18 }
  0x6c   : > { %p1889_p2 = pnand %p1887_p0, %p1873_p1  ;;  %p1895_p6 = scmp.lt.s32.totalorder %s1893_s2, %s1886_s14 }
  0x6e   : > { %p1890_p9 = pneg %p1889_p2  ;;  %p1896_p10 = por %p1895_p6, %p1894_p4 }
  0x70   : > { %p1897_p3 = pnand %p1896_p10, %p1890_p9 }
  0x72   : > { %1900 = shalt.err (!%p1897_p3)
}
  0x73   : > { %s2500_s20 = smov 8   ;;  %s2501_s9 = smov 128  }
  0x74   : > { %1744 = dma.hbm_to_vmem [thread:$0]  (!%p2230_p12), %s2226_s11, 256, %s2234_s28, %s257_s16, %s2501_s9, %s2501_s9, %s2500_s20  }
  0x75   : > { %s1191_s13 = sshll.u32 %s2216_s17, 2  ;;  %s1192_s12 = sshll.u32 %s2021_s25, 6 }
  0x76   : > { %s2273_s2 = scalar_lea.hbm %s2470_s1, %s1192_s12  ;;  %s283_s0 = scalar_lea.vmem [#allocation5], %s1191_s13 }
  0x77   : > { %s291_s4 = sshll.u32 %s283_s0, 4  ;;  %s2502_s10 = sand.u32 1, %s2025_s26   ;;  %s292_s4 = int_to_ptr.vmem [resolvable:$true] %s291_s4 }
  0x78   : > { %s280_s19 = scalar_lea.sflag [#allocation6], %s2502_s10  ;;  %s1901_s23 = scalar_lea.hbm %s2273_s2, 64 }
  0x79   : > { %p1902_p4 = scmp.ne.s32.totalorder %s2273_s2, %s1901_s23  ;;  %s1906_s11 = scalar_lea.hbm %s2470_s1, 128 }
  0x7a   : > { %p1907_p5 = scmp.lt.u32.totalorder %s2273_s2, %s2470_s1  ;;  %p1908_p7 = scmp.lt.u32.totalorder %s1906_s11, %s1901_s23 }
  0x7b   : > { %p1904_p9 = pnand %p1902_p4, %p1873_p1  ;;  %p1910_p0 = scmp.lt.u32.totalorder %s1901_s23, %s2273_s2 }
  0x7c   : > { %p1909_p11 = por %p1908_p7, %p1907_p5 }
  0x7d   : > { %p1905_p13 = pneg %p1904_p9 }
  0x7e   : > { %p1911_p2 = por %p1910_p0, %p1909_p11 }
  0x80   : > { %p1912_p6 = pnand %p1911_p2, %p1905_p13 }
  0x82   : > { %1915 = shalt.err (!%p1912_p6)
}
  0x83   : > { %s1916_s0 = scalar_lea.vmem %s292_s4, 64  ;;  %s2032_s10 = smov [#allocation5]  }
  0x84   : > { %p1917_p10 = scmp.ne.s32.totalorder %s292_s4, %s1916_s0  ;;  %s1921_s9 = sshll.u32 %s2032_s10, 4  ;;  %s1922_s9 = int_to_ptr.vmem [resolvable:$false] %s1921_s9 }
  0x85   : > { %s1923_s13 = scalar_lea.vmem %s1922_s9, 128  ;;  %p1924_p9 = scmp.lt.s32.totalorder %s292_s4, %s1922_s9 }
  0x86   : > { %p1919_p3 = pnand %p1917_p10, %p1873_p1  ;;  %p1925_p8 = scmp.lt.s32.totalorder %s1923_s13, %s1916_s0 }
  0x88   : > { %p1920_p4 = pneg %p1919_p3  ;;  %p1926_p5 = por %p1925_p8, %p1924_p9 }
  0x8a   : > { %p1927_p7 = pnand %p1926_p5, %p1920_p4 }
  0x8c   : > { %1930 = shalt.err (!%p1927_p7)
}
  0x8d   : > { %1747 = dma.hbm_to_vmem [thread:$0]  (!%p2230_p12), %s2273_s2, 64, %s292_s4, %s280_s19  }
  0x8e   : > { %p2503_p13 = scmp.ne.s32.totalorder %s2490_s7, 0 }
  0x8f   : > { %s2299_s23 = sand.u32 (!%p2503_p13), 1, %s2009_s22   ;;  %p2504_p8 = scmp.ne.s32.totalorder (!%p2503_p13), %s2488_s29, 0 }
  0x90   : > { %300 = sbr.rel (%p2503_p13) target bundleno = 719 (0x2cf), region = 44  ;;  %s1194_s12 = sshll.u32 (!%p2503_p13), %s2299_s23, 4 }
  0x91   : > { %s303_s14 = scalar_lea.sflag (!%p2503_p13), [#allocation3], %s2299_s23  ;;  %s2305_s18 = scalar_lea.vmem (!%p2503_p13), [#allocation2], %s1194_s12 }
  0x97   : > { %1984 = dma.done.wait (%p2504_p8), %s303_s14, 256  }
  0x98   : > { %1986 = vsyncadd (%p2504_p8), %s303_s14, 4294967040  ;;  %s311_s4 = sand.u32 1, %s2105_s27   ;;  %s1195_s7 = sshll.u32 %s2299_s23, 2 }
  0x99   : > { %s312_s8 = scalar_lea.sflag [#allocation6], %s311_s4  ;;  %s2313_s19 = scalar_lea.vmem [#allocation5], %s1195_s7 }
  0x9a   : > { %1988 = dma.done.wait (%p2504_p8), %s312_s8, 64  }
  0x9b   : > { %1990 = vsyncadd (%p2504_p8), %s312_s8, 4294967232  ;;  %p2505_p12 = scmp.eq.s32.totalorder %s2105_s27, 0 }
  0x9d   : > { %1992 = dma.done.wait (%p2505_p12), [#allocation6], 6144   ;;  %p2506_p1 = pmov %p2505_p12 }
  0x9f   : > { %1994 = vsyncadd (%p2506_p1), [#allocation6], 4294961152  ;;  %p2507_p11 = pmov %p2506_p1 }
  0xa0   : > { %p2508_p0 = pmov %p2506_p1 }
  0xa1   : > { %1996 = dma.done.wait (%p2507_p11), [#allocation9], 6144  }
  0xa2   : > { %1998 = vsyncadd (%p2508_p0), [#allocation9], 4294961152  ;;  %v2033_v0 = vmov 0.0|0.0   ;;  %vm2034_vm0 = vmmov 0   ;;  %v2035_v1 = vmov 0.0   ;;  %v390_v2 = vld [vmem:[#allocation7 + $0x80] sm:$0xff] }
  0xa3   : > { %1548 = vmatprep.subr.bf16.mxu0 %v2033_v0  ;;  %1572 = vmatprep.subr.bf16.mxu1 %v2033_v0  ;;  %v391_v3 = vld [vmem:[#allocation7 + $0x88] sm:$0xff]  ;;  %v373_v4 = vld [vmem:[#allocation7] sm:$0xff]  ;;  %v392_v7 = vld [vmem:[#allocation7 + $0x90] sm:$0xff]  ;;  %vm364_vm1 = vcmask 1041408   ;;  %vm408_vm2 = vcmask 1046528   ;;  %vm594_vm3 = vcmask 1045504  }
  0xa4   : > { %1352 = vmatprep.mubr.msk.f32.mxu0 %vm2034_vm0, %v2035_v1  ;;  %1393 = vmatprep.mubr.msk.f32.mxu1 %vm2034_vm0, %v2035_v1  ;;  %v1549_v5 = vpack.c.bf16 %v391_v3, %v390_v2  ;;  %v374_v6 = vld [vmem:[#allocation7 + $0x8] sm:$0xff]  ;;  %v393_v8 = vld [vmem:[#allocation7 + $0x98] sm:$0xff]  ;;  %v375_v10 = vld [vmem:[#allocation7 + $0x10] sm:$0xff]  ;;  %s356_s17 = scalar_lea.vmem [#allocation10], %s1194_s12  ;;  %s1208_s16 = sshll.u32 %s2017_s24, 8 }
  0xa5   : > { %v1573_v9 = vpack.c.bf16 %v374_v6, %v373_v4  ;;  %v376_v11 = vld [vmem:[#allocation7 + $0x18] sm:$0xff]  ;;  %v1552_v12 = vpack.c.bf16 %v393_v8, %v392_v7  ;;  %v394_v14 = vld [vmem:[#allocation7 + $0xa0] sm:$0xff]  ;;  %v395_v15 = vld [vmem:[#allocation7 + $0xa8] sm:$0xff]  ;;  %s1052_s11 = sshll.u32 %s356_s17, 4  ;;  %s2420_s10 = scalar_lea.hbm %s2475_s6, %s1208_s16  ;;  %s2414_s11 = int_to_ptr.vmem [resolvable:$true] %s1052_s11 }
  0xa6   : > { %1550 = vmatpush3.bf16.msra.mxu0 %v1549_v5  ;;  %v1576_v13 = vpack.c.bf16 %v376_v11, %v375_v10  ;;  %v377_v16 = vld [vmem:[#allocation7 + $0x20] sm:$0xff]  ;;  %v378_v17 = vld [vmem:[#allocation7 + $0x28] sm:$0xff]  ;;  %v1555_v18 = vpack.c.bf16 %v395_v15, %v394_v14  ;;  %v396_v20 = vld [vmem:[#allocation7 + $0xb0] sm:$0xff]  ;;  %s1037_s9 = scalar_lea.sflag [#allocation4], %s2299_s23  ;;  %s1931_s24 = scalar_lea.vmem %s2414_s11, 256 }
  0xa7   : > { %1574 = vmatpush3.bf16.msra.mxu1 %v1573_v9  ;;  %1551 = vmatprep.subr.bf16.mxu0 %v2033_v0  ;;  %v1579_v19 = vpack.c.bf16 %v378_v17, %v377_v16  ;;  %v397_v21 = vld [vmem:[#allocation7 + $0xb8] sm:$0xff]  ;;  %v379_v22 = vld [vmem:[#allocation7 + $0x30] sm:$0xff]  ;;  %v398_v26 = vld [vmem:[#allocation7 + $0xc0] sm:$0xff]  ;;  %p1932_p2 = scmp.ne.s32.totalorder %s2414_s11, %s1931_s24  ;;  %p2509_p6 = scmp.ne.s32.totalorder %s2496_s15, 0 }
  0xa8   : > { %1575 = vmatprep.subr.bf16.mxu1 %v2033_v0  ;;  %v380_v23 = vld [vmem:[#allocation7 + $0x38] sm:$0xff]  ;;  %v1558_v24 = vpack.c.bf16 %v397_v21, %v396_v20  ;;  %v399_v27 = vld [vmem:[#allocation7 + $0xc8] sm:$0xff]  ;;  %v381_v28 = vld [vmem:[#allocation7 + $0x40] sm:$0xff]  ;;  %s2036_s13 = smov [#allocation10]  }
  0xa9   : > { %v1582_v25 = vpack.c.bf16 %v380_v23, %v379_v22  ;;  %v382_v29 = vld [vmem:[#allocation7 + $0x48] sm:$0xff]  ;;  %v1561_v30 = vpack.c.bf16 %v399_v27, %v398_v26  ;;  %v400_v32 = vld [vmem:[#allocation7 + $0xd0] sm:$0xff]  ;;  %v401_v33 = vld [vmem:[#allocation7 + $0xd8] sm:$0xff]  ;;  %p1933_p10 = pnand %p1932_p2, %p2509_p6  ;;  %s1935_s12 = sshll.u32 %s2036_s13, 4  ;;  %s1936_s12 = int_to_ptr.vmem [resolvable:$false] %s1935_s12 }
  0xaa   : > { %1553 = vmatpush3.bf16.msra.mxu0 %v1552_v12  ;;  %v1585_v31 = vpack.c.bf16 %v382_v29, %v381_v28  ;;  %v383_v34 = vld [vmem:[#allocation7 + $0x50] sm:$0xff]  ;;  %v384_v35 = vld [vmem:[#allocation7 + $0x58] sm:$0xff]  ;;  %v1564_v38 = vpack.c.bf16 %v401_v33, %v400_v32  ;;  %v402_v40 = vld [vmem:[#allocation7 + $0xe0] sm:$0xff]  ;;  %s1937_s14 = scalar_lea.vmem %s1936_s12, 512  ;;  %p1938_p4 = scmp.lt.s32.totalorder %s2414_s11, %s1936_s12 }
  0xab   : > { %1577 = vmatpush3.bf16.msra.mxu1 %v1576_v13  ;;  %1554 = vmatprep.subr.bf16.mxu0 %v2033_v0  ;;  %v2342_v36 = vld [vmem:[%s2305_s18] sm:$0xff]  ;;  %v2345_v37 = vld [vmem:[%s2305_s18 + $0x8] sm:$0xff]  ;;  %v1588_v39 = vpack.c.bf16 %v384_v35, %v383_v34  ;;  %p1934_p3 = pneg %p1933_p10  ;;  %p1939_p9 = scmp.lt.s32.totalorder %s1937_s14, %s1931_s24 }
  0xac   : > { %1578 = vmatprep.subr.bf16.mxu1 %v2033_v0  ;;  %v403_v41 = vld [vmem:[#allocation7 + $0xe8] sm:$0xff]  ;;  %v365_v42 = vrot.slane %v2342_v36, 6  ;;  %v366_v43 = vrot.slane %v2345_v37, 6  ;;  %v385_v44 = vld [vmem:[#allocation7 + $0x60] sm:$0xff]  ;;  %v361_v46 = vld [vmem:[%s2313_s19] sm:$0xf] }
  0xad   : > { %v386_v45 = vld [vmem:[#allocation7 + $0x68] sm:$0xff]  ;;  %v1567_v47 = vpack.c.bf16 %v403_v41, %v402_v40  ;;  %v404_v49 = vld [vmem:[#allocation7 + $0xf0] sm:$0xff]  ;;  %v405_v50 = vld [vmem:[#allocation7 + $0xf8] sm:$0xff]  ;;  %p1940_p5 = por %p1939_p9, %p1938_p4 }
  0xae   : > { %1556 = vmatpush3.bf16.msra.mxu0 %v1555_v18  ;;  %v1591_v48 = vpack.c.bf16 %v386_v45, %v385_v44  ;;  %v2354_v51 = vsel %vm364_vm1, %v365_v42, %v366_v43  ;;  %v2357_v52 = vsel %vm364_vm1, %v361_v46, %v365_v42  ;;  %v387_v53 = vld [vmem:[#allocation7 + $0x70] sm:$0xff]  ;;  %v388_v54 = vld [vmem:[#allocation7 + $0x78] sm:$0xff]  ;;  %v1570_v55 = vpack.c.bf16 %v405_v50, %v404_v49  ;;  %v578_v59 = vld [vmem:[#allocation7 + $0x100] sm:$0xff] }
  0xaf   : > { %1580 = vmatpush3.bf16.msra.mxu1 %v1579_v19  ;;  %1557 = vmatprep.subr.bf16.mxu0 %v2033_v0  ;;  %v409_v56 = vrot.slane %v2357_v52, 1  ;;  %v410_v57 = vrot.slane %v2354_v51, 1  ;;  %v1594_v58 = vpack.c.bf16 %v388_v54, %v387_v53  ;;  %v579_v60 = vld [vmem:[#allocation7 + $0x108] sm:$0xff]  ;;  %v2364_v61 = vsel %vm364_vm1, %v366_v43, %v361_v46  ;;  %v580_v3 = vld [vmem:[#allocation7 + $0x110] sm:$0xff]  ;;  %v581_v4 = vld [vmem:[#allocation7 + $0x118] sm:$0xff]  ;;  %p1941_p7 = pnand %p1940_p5, %p1934_p3 }
  0xb0   : > { %1581 = vmatprep.subr.bf16.mxu1 %v2033_v0  ;;  %v1597_v63 = vpack.c.bf16 %v579_v60, %v578_v59  ;;  %v412_v2 = vrot.slane %v2364_v61, 1  ;;  %v1600_v5 = vpack.c.bf16 %v581_v4, %v580_v3  ;;  %v582_v7 = vld [vmem:[#allocation7 + $0x120] sm:$0xff]  ;;  %v583_v8 = vld [vmem:[#allocation7 + $0x128] sm:$0xff]  ;;  %v584_v10 = vld [vmem:[#allocation7 + $0x130] sm:$0xff]  ;;  %v596_v26 = vrot.slane %v2354_v51, 2 }
  0xb1   : > { %v411_v62 = vsel %vm408_vm2, %v409_v56, %v410_v57  ;;  %v1603_v9 = vpack.c.bf16 %v583_v8, %v582_v7  ;;  %v585_v11 = vld [vmem:[#allocation7 + $0x138] sm:$0xff]  ;;  %v586_v13 = vld [vmem:[#allocation7 + $0x140] sm:$0xff]  ;;  %v587_v14 = vld [vmem:[#allocation7 + $0x148] sm:$0xff]  ;;  %v598_v28 = vrot.slane %v2364_v61, 2 }
  0xb2   : > { %1559 = vmatpush3.bf16.msra.mxu0 %v1558_v24  ;;  %v413_v6 = vsel %vm408_vm2, %v410_v57, %v412_v2  ;;  %v1606_v12 = vpack.c.bf16 %v585_v11, %v584_v10  ;;  %v1609_v15 = vpack.c.bf16 %v587_v14, %v586_v13  ;;  %v588_v16 = vld [vmem:[#allocation7 + $0x150] sm:$0xff]  ;;  %v589_v17 = vld [vmem:[#allocation7 + $0x158] sm:$0xff]  ;;  %v590_v19 = vld [vmem:[#allocation7 + $0x160] sm:$0xff] }
  0xb3   : > { %1583 = vmatpush3.bf16.msra.mxu1 %v1582_v25  ;;  %1560 = vmatprep.subr.bf16.mxu0 %v2033_v0  ;;  %v1612_v18 = vpack.c.bf16 %v589_v17, %v588_v16  ;;  %v591_v20 = vld [vmem:[#allocation7 + $0x168] sm:$0xff]  ;;  %v592_v22 = vld [vmem:[#allocation7 + $0x170] sm:$0xff]  ;;  %v593_v23 = vld [vmem:[#allocation7 + $0x178] sm:$0xff]  ;;  %v595_v25 = vrot.slane %v2357_v52, 2  ;;  %v599_v29 = vsel %vm594_vm3, %v596_v26, %v598_v28 }
  0xb4   : > { %1584 = vmatprep.subr.bf16.mxu1 %v2033_v0  ;;  %v1615_v21 = vpack.c.bf16 %v591_v20, %v590_v19  ;;  %v1618_v24 = vpack.c.bf16 %v593_v23, %v592_v22  ;;  %v730_v33 = vld [vmem:[#allocation8 + $0x18] sm:$0xff]  ;;  %v731_v34 = vld [vmem:[#allocation8 + $0x20] sm:$0xff]  ;;  %v745_v40 = vld [vmem:[#allocation8 + $0x88] sm:$0xff] }
  0xb5   : > { %v597_v27 = vsel %vm594_vm3, %v595_v25, %v596_v26  ;;  %v746_v42 = vld [vmem:[#allocation8 + $0x90] sm:$0xff]  ;;  %v747_v43 = vld [vmem:[#allocation8 + $0x98] sm:$0xff]  ;;  %v735_v53 = vld [vmem:[#allocation8 + $0x40] sm:$0xff] }
  0xb6   : > { %1562 = vmatpush3.bf16.msra.mxu0 %v1561_v30  ;;  %v727_v30 = vld [vmem:[#allocation8] sm:$0xff]  ;;  %v1624_v44 = vpack.c.bf16 %v747_v43, %v746_v42  ;;  %v734_v46 = vld [vmem:[#allocation8 + $0x38] sm:$0xff]  ;;  %v750_v50 = vld [vmem:[#allocation8 + $0xb0] sm:$0xff] }
  0xb7   : > { %1586 = vmatpush3.bf16.msra.mxu1 %v1585_v31  ;;  %1563 = vmatprep.subr.bf16.mxu0 %v2033_v0  ;;  %v728_v31 = vld [vmem:[#allocation8 + $0x8] sm:$0xff]  ;;  %v737_v57 = vld [vmem:[#allocation8 + $0x50] sm:$0xff]  ;;  %v739_v60 = vld [vmem:[#allocation8 + $0x60] sm:$0xff] }
  0xb8   : > { %1587 = vmatprep.subr.bf16.mxu1 %v2033_v0  ;;  %v1652_v32 = vpack.c.bf16 %v728_v31, %v727_v30  ;;  %v736_v54 = vld [vmem:[#allocation8 + $0x48] sm:$0xff]  ;;  %v741_v4 = vld [vmem:[#allocation8 + $0x70] sm:$0xff]  ;;  %v755_v8 = vld [vmem:[#allocation8 + $0xd8] sm:$0xff] }
  0xb9   : > { %v1668_v56 = vpack.c.bf16 %v736_v54, %v735_v53  ;;  %v754_v7 = vld [vmem:[#allocation8 + $0xd0] sm:$0xff]  ;;  %v921_v10 = vld [vmem:[#allocation8 + $0x100] sm:$0xff]  ;;  %v922_v11 = vld [vmem:[#allocation8 + $0x108] sm:$0xff] }
  0xba   : > { %1565 = vmatpush3.bf16.msra.mxu0 %v1564_v38  ;;  %v732_v38 = vld [vmem:[#allocation8 + $0x28] sm:$0xff]  ;;  %v756_v13 = vld [vmem:[#allocation8 + $0xe0] sm:$0xff]  ;;  %v758_v16 = vld [vmem:[#allocation8 + $0xf0] sm:$0xff] }
  0xbb   : > { %1589 = vmatpush3.bf16.msra.mxu1 %v1588_v39  ;;  %1566 = vmatprep.subr.bf16.mxu0 %v2033_v0  ;;  %v744_v39 = vld [vmem:[#allocation8 + $0x80] sm:$0xff]  ;;  %v1660_v45 = vpack.c.bf16 %v732_v38, %v731_v34  ;;  %v757_v14 = vld [vmem:[#allocation8 + $0xe8] sm:$0xff]  ;;  %v759_v17 = vld [vmem:[#allocation8 + $0xf8] sm:$0xff] }
  0xbc   : > { %1590 = vmatprep.subr.bf16.mxu1 %v2033_v0  ;;  %v1620_v41 = vpack.c.bf16 %v745_v40, %v744_v39  ;;  %v1199_v38 = vld [vmem:[%s2472_s3] ss:$0 sm:$0xff] }
  0xbe   : > { %1568 = vmatpush3.bf16.msra.mxu0 %v1567_v47  ;;  %v748_v47 = vld [vmem:[#allocation8 + $0xa0] sm:$0xff] }
  0xbf   : > { %1592 = vmatpush3.bf16.msra.mxu1 %v1591_v48  ;;  %1569 = vmatprep.subr.bf16.mxu0 %v2033_v0  ;;  %v749_v48 = vld [vmem:[#allocation8 + $0xa8] sm:$0xff] }
  0xc0   : > { %1593 = vmatprep.subr.bf16.mxu1 %v2033_v0  ;;  %v1628_v49 = vpack.c.bf16 %v749_v48, %v748_v47  ;;  %v923_v47 = vld [vmem:[#allocation8 + $0x110] sm:$0xff]  ;;  %v924_v48 = vld [vmem:[#allocation8 + $0x118] sm:$0xff] }
  0xc2   : > { %1571 = vmatpush3.bf16.msra.mxu0 %v1570_v55 }
  0xc3   : > { %1595 = vmatpush3.bf16.msra.mxu1 %v1594_v58  ;;  %1596 = vmatprep.subr.bf16.mxu0 %v2033_v0  ;;  %v738_v58 = vld [vmem:[#allocation8 + $0x58] sm:$0xff] }
  0xc4   : > { %1653 = vmatprep.subr.bf16.mxu1 %v1652_v32  ;;  %v1672_v59 = vpack.c.bf16 %v738_v58, %v737_v57  ;;  %v925_v58 = vld [vmem:[#allocation8 + $0x120] sm:$0xff] }
  0xc5   : > { %1353 = vmatmul.mubr.f32.vlgmr.msra.gmra.mrb[0].mxu0 %v411_v62 }
  0xc6   : > { %1394 = vmatmul.mubr.f32.vlgmr.msra.gmra.mrb[0].mxu1 %v2357_v52  ;;  %1598 = vmatpush3.bf16.msra.mxu0 %v1597_v63  ;;  %v751_v52 = vld [vmem:[#allocation8 + $0xb8] sm:$0xff]  ;;  %v752_v63 = vld [vmem:[#allocation8 + $0xc0] sm:$0xff] }
  0xc7   : > { %1599 = vmatprep.subr.bf16.mxu0 %v2033_v0  ;;  %1355 = vmatprep.mubr.msk.f32.mxu0 %vm2034_vm0, %v2035_v1  ;;  %v1632_v55 = vpack.c.bf16 %v751_v52, %v750_v50 }
  0xc8   : > { %1396 = vmatprep.mubr.msk.f32.mxu1 %vm2034_vm0, %v2035_v1  ;;  %1655 = vmatpush3.bf16.msra.mxu1 %v1652_v32 }
  0xc9   : > { %1356 = vmatmul.mubr.f32.gmra.mrb[2].mxu0 %v413_v6 }
  0xca   : > { %1601 = vmatpush3.bf16.msra.mxu0 %v1600_v5  ;;  %1397 = vmatmul.mubr.f32.gmra.mrb[2].mxu1 %v2354_v51  ;;  %v742_v5 = vld [vmem:[#allocation8 + $0x78] sm:$0xff] }
  0xcb   : > { %1602 = vmatprep.subr.bf16.mxu0 %v2033_v0  ;;  %1358 = vmatprep.mubr.msk.f32.mxu0 %vm2034_vm0, %v2035_v1  ;;  %v1680_v6 = vpack.c.bf16 %v742_v5, %v741_v4 }
  0xcc   : > { %1399 = vmatprep.mubr.msk.f32.mxu1 %vm2034_vm0, %v2035_v1 }
  0xcd   : > { %1359 = vmatmul.mubr.f32.gmra.mrb[4].mxu0 %v412_v2  ;;  %v753_v2 = vld [vmem:[#allocation8 + $0xc8] sm:$0xff] }
  0xce   : > { %1604 = vmatpush3.bf16.msra.mxu0 %v1603_v9  ;;  %1400 = vmatmul.mubr.f32.gmra.mrb[4].mxu1 %v2364_v61  ;;  %v740_v61 = vld [vmem:[#allocation8 + $0x68] sm:$0xff]  ;;  %v1636_v3 = vpack.c.bf16 %v753_v2, %v752_v63  ;;  %v1640_v9 = vpack.c.bf16 %v755_v8, %v754_v7  ;;  %v928_v7 = vld [vmem:[#allocation8 + $0x138] sm:$0xff] }
  0xcf   : > { %1605 = vmatprep.subr.bf16.mxu0 %v2033_v0  ;;  %1434 = vmatprep.mubr.msk.f32.mxu0 %vm2034_vm0, %v2035_v1  ;;  %v1676_v62 = vpack.c.bf16 %v740_v61, %v739_v60 }
  0xd2   : > { %1607 = vmatpush3.bf16.msra.mxu0 %v1606_v12  ;;  %v1684_v12 = vpack.c.bf16 %v922_v11, %v921_v10 }
  0xd3   : > { %1608 = vmatprep.subr.bf16.mxu0 %v2033_v0 }
  0xd6   : > { %1610 = vmatpush3.bf16.msra.mxu0 %v1609_v15  ;;  %v1644_v15 = vpack.c.bf16 %v757_v14, %v756_v13  ;;  %v930_v14 = vld [vmem:[#allocation8 + $0x148] sm:$0xff] }
  0xd7   : > { %1611 = vmatprep.subr.bf16.mxu0 %v2033_v0 }
  0xda   : > { %1613 = vmatpush3.bf16.msra.mxu0 %v1612_v18  ;;  %v1648_v18 = vpack.c.bf16 %v759_v17, %v758_v16  ;;  %v931_v17 = vld [vmem:[#allocation8 + $0x150] sm:$0xff] }
  0xdb   : > { %1614 = vmatprep.subr.bf16.mxu0 %v2033_v0 }
  0xde   : > { %1616 = vmatpush3.bf16.msra.mxu0 %v1615_v21 }
  0xdf   : > { %1617 = vmatprep.subr.bf16.mxu0 %v2033_v0  ;;  %v729_v0 = vld [vmem:[#allocation8 + $0x10] sm:$0xff] }
  0xe0   : > { %v1656_v35 = vpack.c.bf16 %v730_v33, %v729_v0  ;;  %v701_v33 = vlaneseq }
  0xe2   : > { %1619 = vmatpush3.bf16.msra.mxu0 %v1618_v24  ;;  %1657 = vmatprep.subr.bf16.mxu1 %v1656_v35  ;;  %v702_v34 = vshrl.u32 %v701_v33, 7 }
  0xe3   : > { %1621 = vmatprep.subr.bf16.mxu0 %v1620_v41  ;;  %1659 = vmatpush3.bf16.msra.mxu1 %v1656_v35 }
  0xe4   : > { %1661 = vmatprep.subr.bf16.mxu1 %v1660_v45  ;;  %v706_v39 = vadd.s32 4294967295, %v702_v34 }
  0xe5   : > { %1435 = vmatmul.mubr.f32.vlgmr.msra.gmra.mrb[6].mxu0 %v597_v27 }
  0xe6   : > { %1437 = vmatprep.mubr.msk.f32.mxu0 %vm2034_vm0, %v2035_v1  ;;  %1623 = vmatpush3.bf16.msra.mxu0 %v1620_v41  ;;  %vm709_vm4 = vcmp.ge.s32.totalorder %v706_v39, 0 }
  0xe7   : > { %1625 = vmatprep.subr.bf16.mxu0 %v1624_v44  ;;  %1663 = vmatpush3.bf16.msra.mxu1 %v1660_v45 }
  0xe9   : > { %1438 = vmatmul.mubr.f32.gmra.mrb[8].mxu0 %v599_v29 }
  0xea   : > { %1440 = vmatprep.mubr.msk.f32.mxu0 %vm2034_vm0, %v2035_v1  ;;  %v733_v1 = vld [vmem:[#allocation8 + $0x30] sm:$0xff]  ;;  %1627 = vmatpush3.bf16.msra.mxu0 %v1624_v44  ;;  %v704_v44 = vadd.s32 16, %v702_v34 }
  0xeb   : > { %v1664_v51 = vpack.c.bf16 %v734_v46, %v733_v1  ;;  %1629 = vmatprep.subr.bf16.mxu0 %v1628_v49 }
  0xec   : > { %v708_v52 = vadd.s32 4294967295, %v704_v44 }
  0xed   : > { %1441 = vmatmul.mubr.f32.gmra.mrb[10].mxu0 %v598_v28  ;;  %1665 = vmatprep.subr.bf16.mxu1 %v1664_v51 }
  0xee   : > { %1631 = vmatpush3.bf16.msra.mxu0 %v1628_v49  ;;  %1667 = vmatpush3.bf16.msra.mxu1 %v1664_v51  ;;  %vm714_vm5 = vcmp.lt.s32.totalorder %v708_v52, 16 }
  0xef   : > { %1633 = vmatprep.subr.bf16.mxu0 %v1632_v55  ;;  %1669 = vmatprep.subr.bf16.mxu1 %v1668_v56 }
  0xf2   : > { %1635 = vmatpush3.bf16.msra.mxu0 %v1632_v55  ;;  %1671 = vmatpush3.bf16.msra.mxu1 %v1668_v56  ;;  %v1688_v55 = vpack.c.bf16 %v924_v48, %v923_v47 }
  0xf3   : > { %1673 = vmatprep.subr.bf16.mxu1 %v1672_v59  ;;  %1637 = vmatprep.subr.bf16.mxu0 %v1636_v3 }
  0xf6   : > { %1675 = vmatpush3.bf16.msra.mxu1 %v1672_v59  ;;  %1639 = vmatpush3.bf16.msra.mxu0 %v1636_v3  ;;  %v926_v59 = vld [vmem:[#allocation8 + $0x128] sm:$0xff] }
  0xf7   : > { %1677 = vmatprep.subr.bf16.mxu1 %v1676_v62  ;;  %1641 = vmatprep.subr.bf16.mxu0 %v1640_v9  ;;  %v1692_v5 = vpack.c.bf16 %v926_v59, %v925_v58 }
  0xfa   : > { %1679 = vmatpush3.bf16.msra.mxu1 %v1676_v62  ;;  %1643 = vmatpush3.bf16.msra.mxu0 %v1640_v9 }
  0xfb   : > { %1681 = vmatprep.subr.bf16.mxu1 %v1680_v6  ;;  %1645 = vmatprep.subr.bf16.mxu0 %v1644_v15 }
  0xfe   : > { %1683 = vmatpush3.bf16.msra.mxu1 %v1680_v6  ;;  %1647 = vmatpush3.bf16.msra.mxu0 %v1644_v15  ;;  %v927_v6 = vld [vmem:[#allocation8 + $0x130] sm:$0xff] }
  0xff   : > { %1685 = vmatprep.subr.bf16.mxu1 %v1684_v12  ;;  %1649 = vmatprep.subr.bf16.mxu0 %v1648_v18  ;;  %v1696_v11 = vpack.c.bf16 %v928_v7, %v927_v6 }
 0x102   : > { %1651 = vmatpush3.bf16.msra.mxu0 %v1648_v18  ;;  %v932_v18 = vld [vmem:[#allocation8 + $0x158] sm:$0xff] }
 0x198   : > { %v483_v19 = vpop.f32.mrb[0].mxu0 }
 0x199   : > { %v1354_v20 = vpop.f32.mrb[1].mxu0  ;;  %v563_v21 = vpop.f32.mrb[0].mxu1 }
 0x19a   : > { %v564_v22 = vadd.f32 %v563_v21, %v483_v19  ;;  %v1395_v23 = vpop.f32.mrb[1].mxu1  ;;  %v1704_v19 = vpack.c.bf16 %v932_v18, %v931_v17  ;;  %v933_v20 = vld [vmem:[#allocation8 + $0x160] sm:$0xff]  ;;  %v934_v21 = vld [vmem:[#allocation8 + $0x168] sm:$0xff] }
 0x19b   : > { %v935_v23 = vld [vmem:[#allocation8 + $0x170] sm:$0xff] }
 0x19c   : > { %v488_v24 = vpop.f32.mrb[2].mxu0 }
 0x19d   : > { %v1357_v25 = vpop.f32.mrb[3].mxu0  ;;  %v568_v26 = vpop.f32.mrb[2].mxu1 }
 0x19e   : > { %v569_v27 = vadd.f32 %v568_v26, %v488_v24  ;;  %v1398_v28 = vpop.f32.mrb[3].mxu1  ;;  %v936_v24 = vld [vmem:[#allocation8 + $0x178] sm:$0xff] }
 0x19f   : > { %v1712_v25 = vpack.c.bf16 %v936_v24, %v935_v23 }
 0x1a0   : > { %v493_v29 = vpop.f32.mrb[4].mxu0 }
 0x1a1   : > { %v1360_v30 = vpop.f32.mrb[5].mxu0  ;;  %v573_v31 = vpop.f32.mrb[4].mxu1 }
 0x1a2   : > { %v574_v0 = vadd.f32 %v573_v31, %v493_v29  ;;  %v1401_v32 = vpop.f32.mrb[5].mxu1  ;;  %v1201_v29 = vld [vmem:[%s2474_s5] ss:$0 sm:$0xff] }
 0x1b8   : > { %v669_v35 = vpop.f32.mrb[6].mxu0 }
 0x1b9   : > { %v683_v40 = vadd.f32 %v669_v35, %v564_v22  ;;  %v1436_v41 = vpop.f32.mrb[7].mxu0  ;;  %v1708_v22 = vpack.c.bf16 %v934_v21, %v933_v20 }
 0x1bb   : > { %v693_v42 = vadd.f32 %v1199_v38, %v683_v40 }
 0x1bc   : > { %v674_v43 = vpop.f32.mrb[8].mxu0 }
 0x1bd   : > { %v696_v45 = vmax.f32 %v693_v42, 0.0  ;;  %v684_v1 = vadd.f32 %v674_v43, %v569_v27  ;;  %v1439_v46 = vpop.f32.mrb[9].mxu0 }
 0x1bf   : > { %v694_v49 = vadd.f32 %v1199_v38, %v684_v1  ;;  %v724_v50 = vsel %vm709_vm4, %v696_v45, 0.0  ;;  %1510 = vmatprep.mubr.msk.f32.mxu1 %vm709_vm4, %v696_v45 }
 0x1c0   : > { %v679_v51 = vpop.f32.mrb[10].mxu0  ;;  %v763_v57 = vrot.slane %v724_v50, 1  ;;  %v937_v60 = vrot.slane %v724_v50, 2 }
 0x1c1   : > { %v697_v53 = vmax.f32 %v694_v49, 0.0  ;;  %v685_v54 = vadd.f32 %v679_v51, %v574_v0  ;;  %v1442_v56 = vpop.f32.mrb[11].mxu0 }
 0x1c3   : > { %v695_v61 = vadd.f32 %v1199_v38, %v685_v54  ;;  %1511 = vmatmul.mubr.f32.vlgmr.msra.gmra.mrb[6].mxu1 %v697_v53  ;;  %v764_v62 = vrot.slane %v697_v53, 1  ;;  %v938_v63 = vrot.slane %v697_v53, 2 }
 0x1c4   : > { %1687 = vmatpush3.bf16.msra.mxu1 %v1684_v12  ;;  %v929_v12 = vld [vmem:[#allocation8 + $0x140] sm:$0xff] }
 0x1c5   : > { %v698_v2 = vmax.f32 %v695_v61, 0.0  ;;  %v765_v3 = vsel %vm408_vm2, %v763_v57, %v764_v62  ;;  %1689 = vmatprep.subr.bf16.mxu1 %v1688_v55  ;;  %v939_v4 = vsel %vm594_vm3, %v937_v60, %v938_v63  ;;  %v1700_v16 = vpack.c.bf16 %v930_v14, %v929_v12 }
 0x1c6   : > { %1475 = vmatprep.mubr.f32.mxu0 %v765_v3  ;;  %1545 = vmatprep.mubr.f32.mxu1 %v939_v4 }
 0x1c7   : > { %v726_v8 = vsel %vm714_vm5, %v698_v2, 0.0 }
 0x1c8   : > { %v766_v9 = vrot.slane %v726_v8, 1  ;;  %v940_v10 = vrot.slane %v726_v8, 2  ;;  %1691 = vmatpush3.bf16.msra.mxu1 %v1688_v55 }
 0x1c9   : > { %1693 = vmatprep.subr.bf16.mxu1 %v1692_v5 }
 0x1ca   : > { %v767_v13 = vsel %vm408_vm2, %v764_v62, %v766_v9  ;;  %v941_v15 = vsel %vm594_vm3, %v938_v63, %v940_v10 }
 0x1cb   : > { %1476 = vmatmul.mubr.f32.vlgmr.msra.gmra.mrb[12].mxu0 %v767_v13 }
 0x1cc   : > { %1695 = vmatpush3.bf16.msra.mxu1 %v1692_v5 }
 0x1cd   : > { %1697 = vmatprep.subr.bf16.mxu1 %v1696_v11 }
 0x1d0   : > { %1699 = vmatpush3.bf16.msra.mxu1 %v1696_v11 }
 0x1d1   : > { %1701 = vmatprep.subr.bf16.mxu1 %v1700_v16 }
 0x1d4   : > { %1703 = vmatpush3.bf16.msra.mxu1 %v1700_v16 }
 0x1d5   : > { %1705 = vmatprep.subr.bf16.mxu1 %v1704_v19 }
 0x1d8   : > { %1707 = vmatpush3.bf16.msra.mxu1 %v1704_v19 }
 0x1d9   : > { %1709 = vmatprep.subr.bf16.mxu1 %v1708_v22 }
 0x1dc   : > { %1711 = vmatpush3.bf16.msra.mxu1 %v1708_v22 }
 0x1dd   : > { %1713 = vmatprep.subr.bf16.mxu1 %v1712_v25 }
 0x1e0   : > { %1715 = vmatpush3.bf16.msra.mxu1 %v1712_v25 }
 0x1e3   : > { %1546 = vmatmul.mubr.f32.vlgmr.msra.gmra.mrb[6].mxu1 %v941_v15 }
 0x29e   : > { %v1477_v26 = vpop.f32.mrb[12].mxu0 }
 0x29f   : > { %v836_v27 = vpop.f32.mrb[13].mxu0 }
 0x2b6   : > { %v1547_v28 = vpop.f32.mrb[6].mxu1 }
 0x2b7   : > { %v1716_v30 = vadd.f32 %v1547_v28, %v1477_v26  ;;  %v1010_v31 = vpop.f32.mrb[7].mxu1 }
 0x2b8   : > { %v1717_v0 = vadd.f32 %v1010_v31, %v836_v27 }
 0x2b9   : > { %v1029_v32 = vadd.f32 %v1716_v30, %v1201_v29 }
 0x2ba   : > { %v1028_v33 = vadd.f32 %v1717_v0, %v1201_v29 }
 0x2bb   : > { %v1031_v34 = vadd.f32 %v1029_v32, %v2345_v37 }
 0x2bc   : > { %v1030_v35 = vadd.f32 %v1028_v33, %v2342_v36 }
 0x2bd   : > { %v1033_v38 = vmax.f32 %v1031_v34, 0.0 }
 0x2be   : > { %v1032_v39 = vmax.f32 %v1030_v35, 0.0 }
 0x2bf   : > { %1035 = vst [vmem:[%s356_s17 + $0x8] sm:$0xff] %v1033_v38 }
 0x2c0   : > { %1034 = vst [vmem:[%s356_s17] sm:$0xff] %v1032_v39 }
 0x2c1   : > { %1944 = shalt.err (!%p1941_p7)
}
 0x2c2   : > { %s1945_s18 = scalar_lea.hbm %s2420_s10, 256  ;;  %s1949_s8 = scalar_lea.hbm %s2475_s6, 512 }
 0x2c3   : > { %p1946_p13 = scmp.ne.s32.totalorder %s2420_s10, %s1945_s18  ;;  %p1950_p1 = scmp.lt.u32.totalorder %s2420_s10, %s2475_s6 }
 0x2c4   : > { %p1951_p11 = scmp.lt.u32.totalorder %s1949_s8, %s1945_s18  ;;  %p1953_p2 = scmp.lt.u32.totalorder %s1945_s18, %s2420_s10 }
 0x2c5   : > { %p1947_p8 = pnand %p1946_p13, %p2509_p6 }
 0x2c6   : > { %p1952_p0 = por %p1951_p11, %p1950_p1 }
 0x2c7   : > { %p1948_p12 = pneg %p1947_p8 }
 0x2c8   : > { %p1954_p10 = por %p1953_p2, %p1952_p0 }
 0x2ca   : > { %p1955_p3 = pnand %p1954_p10, %p1948_p12 }
 0x2cc   : > { %1958 = shalt.err (!%p1955_p3)
}
 0x2cd   : > { %s2037_s29 = smov 128   ;;  %s2038_s2 = smov 8  }
 0x2ce   : > { %1732 = dma.vmem_to_hbm [thread:$0]  (%p2509_p6), %s2414_s11, 256, %s2420_s10, %s1037_s9, %s2037_s29, %s2037_s29, %s2038_s2  }
 0x2cf PF: > { %s1067_s28 = sand.u32 1, %s2005_s21   ;;  %p2510_p4 = scmp.ne.s32.totalorder %s2489_s30, 0 }
 0x2d0   : > { %p2511_p9 = scmp.ge.s32.totalorder %s2025_s26, 2  ;;  %s1068_s17 = scalar_lea.sflag [#allocation4], %s1067_s28 }
 0x2d2   : > { %p1749_p5 = pnand %p2511_p9, %p2510_p4 }
 0x2d4   : > { %2000 = dma.done.wait (!%p1749_p5), %s1068_s17, 256  }
 0x2d5   : > { %2002 = vsyncadd (!%p1749_p5), %s1068_s17, 4294967040  ;;  %s26_s26 = sadd.s32 1, %s2025_s26   ;;  %s2512_s16 = sld [smem:[#allocation16_spill]] }
 0x2d6   : > { %p23_p7 = scmp.ge.s32.totalorder %s26_s26, 4   ;;  %s2513_s23 = sld [smem:[#allocation18_spill]] }
 0x2d7   : > { %s2514_s15 = sld [smem:[#allocation17_spill]]  ;;  %s2515_s21 = smov %s2009_s22 }
 0x2d8   : > { %s2517_s24 = smov %s2021_s25  ;;  %25 = sbr.rel (!%p23_p7) target bundleno = 13 (0xd), region = 114 }
 0x2db   : > { %s2516_s22 = smov %s2512_s16 }
 0x2dd   : > { %s2518_s25 = smov %s2514_s15 }
 0x2df   :  { %1073 = vsyncpa [#allocation3], 1 }
 0x2e0   :  { %1075 = vsyncpa [#allocation3 + $0x1], 1 }
 0x2e1   :  { %1076 = vsyncpa [#allocation6], 1 }
 0x2e2   :  { %1078 = vsyncpa [#allocation6 + $0x1], 1 }
 0x2e3   :  { %1079 = vsyncpa [#allocation9], 1 }
 0x2e4   :  { %1080 = vsyncpa [#allocation4], 1 }
 0x2e5   :  { %1082 = vsyncpa [#allocation4 + $0x1], 1 }

</bundles_post_ra>
